<compile_context>
chip_gen: v7x
topology: tpu7x:2x2x1
jax: 0.10.0
libtpu: 0.0.40
codegen_flags: <defaults>
</compile_context>

<pallas_src>
import functools

import jax
import jax.numpy as jnp
import numpy as np
from jax.experimental import pallas as pl
from jax.experimental.pallas import tpu as pltpu

# Per-block working-set budget (double-buffered I/O + im2col + scratch + acc).
_BLOCK_BUDGET_BYTES = 8 * 1024 * 1024
# Explicit scoped-VMEM request: safe on v5e/v6e (128 MiB) and v7x (64 MiB).
_VMEM_LIMIT_BYTES = 32 * 1024 * 1024


def _pick_tile(total, per_unit_bytes, multiple_of=1):
    """Largest divisor of `total` that fits the VMEM budget.

    For dims mapped to the sublane axis, tiles must be multiples of 8 (or the
    full extent); pass multiple_of=8 in that case.
    """
    cands = [d for d in range(1, total + 1)
             if total % d == 0 and (d % multiple_of == 0 or d == total)]
    fitting = [d for d in cands if d * per_unit_bytes <= _BLOCK_BUDGET_BYTES]
    return max(fitting) if fitting else min(cands)


# ----------------------------------------------------------------------------
# Kernels
# ----------------------------------------------------------------------------
def _conv_w_kernel(x_ref, w_ref, scale_ref, bias_ref, out_ref, xpad_ref, *, k):
    """(1,k) conv along W + folded BN + SiLU on one (TM, W, Cin) block."""
    tm, l, cin = x_ref.shape
    pad = k // 2
    # Zero-padded halo lives in a VMEM scratch (f32) -- no HBM pad copy.
    if pad > 0:
        zeros = jnp.zeros((tm, pad, cin), jnp.float32)
        xpad_ref[:, :pad, :] = zeros
        xpad_ref[:, pad + l:, :] = zeros
    xpad_ref[:, pad:pad + l, :] = x_ref[...].astype(jnp.float32)
    # im2col: one (TM, W, k*Cin) x (k*Cin, Cout) MXU contraction.
    taps = [xpad_ref[:, t:t + l, :] for t in range(k)]
    cols = taps[0] if k == 1 else jnp.concatenate(taps, axis=-1)
    acc = jax.lax.dot_general(
        cols.astype(w_ref.dtype), w_ref[...],
        dimension_numbers=(((2,), (0,)), ((), ())),
        preferred_element_type=jnp.float32)
    y = acc * scale_ref[...] + bias_ref[...]                  # folded BN (f32)
    out_ref[...] = (y * jax.nn.sigmoid(y)).astype(out_ref.dtype)  # SiLU


def _conv_h_kernel(x_ref, w_ref, scale_ref, bias_ref, *rest, k, has_residual):
    """(k,1) conv along H + folded BN + SiLU (+ residual) on one (1, H, TW, Cin) block."""
    if has_residual:
        res_ref, out_ref, xpad_ref = rest
    else:
        out_ref, xpad_ref = rest
    _, h, tw, cin = x_ref.shape
    pad = k // 2
    if pad > 0:
        zeros = jnp.zeros((pad, tw, cin), jnp.float32)
        xpad_ref[:pad] = zeros
        xpad_ref[pad + h:] = zeros
    xpad_ref[pad:pad + h] = x_ref[0].astype(jnp.float32)
    # im2col along the (cheap) leading axis, then one MXU contraction.
    taps = [xpad_ref[t:t + h] for t in range(k)]
    cols = taps[0] if k == 1 else jnp.concatenate(taps, axis=-1)
    acc = jax.lax.dot_general(
        cols.astype(w_ref.dtype), w_ref[...],
        dimension_numbers=(((2,), (0,)), ((), ())),
        preferred_element_type=jnp.float32)
    y = acc * scale_ref[...] + bias_ref[...]
    y = y * jax.nn.sigmoid(y)
    if has_residual:
        y = y + res_ref[0].astype(jnp.float32)                # fused shortcut
    out_ref[0] = y.astype(out_ref.dtype)


# ----------------------------------------------------------------------------
# Per-conv wrappers (grid/tiling decisions + pallas_call)
# ----------------------------------------------------------------------------
def _conv1d_w(x_mlc, w_mat, scale, bias, k, out_dtype):
    """Conv along axis 1 of (M, L, Cin) with 'same' padding, stride 1, + BN + SiLU."""
    m, l, cin = x_mlc.shape
    kcin, cout = w_mat.shape
    assert kcin == k * cin
    scale = jnp.asarray(scale, jnp.float32).reshape(1, 1, cout)
    bias = jnp.asarray(bias, jnp.float32).reshape(1, 1, cout)

    x_item = jnp.dtype(x_mlc.dtype).itemsize
    o_item = jnp.dtype(out_dtype).itemsize
    # double-buffered in/out blocks + f32 scratch + im2col + f32 accumulator
    per_row = l * (2 * cin * x_item + 2 * cout * o_item
                   + cin * 4 + k * cin * 4 + cout * 4) + 2 * (k // 2) * cin * 4
    tm = _pick_tile(m, per_row)
    grid = (m // tm,)

    cost = pl.CostEstimate(
        flops=2 * m * l * k * cin * cout,
        transcendentals=m * l * cout,
        bytes_accessed=(m * l * cin * x_item + k * cin * cout * x_item
                        + m * l * cout * o_item))
    kern = functools.partial(_conv_w_kernel, k=k)
    return pl.pallas_call(
        kern,
        out_shape=jax.ShapeDtypeStruct((m, l, cout), out_dtype),
        grid=grid,
        in_specs=[
            pl.BlockSpec((tm, l, cin), lambda i: (i, 0, 0)),
            pl.BlockSpec((k * cin, cout), lambda i: (0, 0)),
            pl.BlockSpec((1, 1, cout), lambda i: (0, 0, 0)),
            pl.BlockSpec((1, 1, cout), lambda i: (0, 0, 0)),
        ],
        out_specs=pl.BlockSpec((tm, l, cout), lambda i: (i, 0, 0)),
        scratch_shapes=[pltpu.VMEM((tm, l + 2 * (k // 2), cin), jnp.float32)],
        compiler_params=pltpu.CompilerParams(
            dimension_semantics=("parallel",),
            vmem_limit_bytes=_VMEM_LIMIT_BYTES),
        cost_estimate=cost,
    )(x_mlc, w_mat, scale, bias)


def _conv1d_h(x_nhwc, w_mat, scale, bias, k, residual, out_dtype):
    """Conv along H of NHWC with 'same' padding, stride 1, + BN + SiLU [+ residual]."""
    n, h, w, cin = x_nhwc.shape
    kcin, cout = w_mat.shape
    assert kcin == k * cin
    has_res = residual is not None
    scale = jnp.asarray(scale, jnp.float32).reshape(1, 1, cout)
    bias = jnp.asarray(bias, jnp.float32).reshape(1, 1, cout)

    x_item = jnp.dtype(x_nhwc.dtype).itemsize
    o_item = jnp.dtype(out_dtype).itemsize
    r_item = jnp.dtype(residual.dtype).itemsize if has_res else 0
    per_col = h * (2 * cin * x_item + 2 * cout * (o_item + r_item)
                   + cin * 4 + k * cin * 4 + cout * 4) + 2 * (k // 2) * cin * 4
    tw = _pick_tile(w, per_col, multiple_of=8)   # sublane dim: multiple of 8 or full
    grid = (n, w // tw)

    in_specs = [
        pl.BlockSpec((1, h, tw, cin), lambda b, j: (b, 0, j, 0)),
        pl.BlockSpec((k * cin, cout), lambda b, j: (0, 0)),
        pl.BlockSpec((1, 1, cout), lambda b, j: (0, 0, 0)),
        pl.BlockSpec((1, 1, cout), lambda b, j: (0, 0, 0)),
    ]
    args = [x_nhwc, w_mat, scale, bias]
    if has_res:
        in_specs.append(pl.BlockSpec((1, h, tw, cout), lambda b, j: (b, 0, j, 0)))
        args.append(residual)

    cost = pl.CostEstimate(
        flops=2 * n * h * w * k * cin * cout,
        transcendentals=n * h * w * cout,
        bytes_accessed=(n * h * w * cin * x_item + k * cin * cout * x_item
                        + n * h * w * cout * (o_item + r_item)))
    kern = functools.partial(_conv_h_kernel, k=k, has_residual=has_res)
    return pl.pallas_call(
        kern,
        out_shape=jax.ShapeDtypeStruct((n, h, w, cout), out_dtype),
        grid=grid,
        in_specs=in_specs,
        out_specs=pl.BlockSpec((1, h, tw, cout), lambda b, j: (b, 0, j, 0)),
        scratch_shapes=[pltpu.VMEM((h + 2 * (k // 2), tw, cin), jnp.float32)],
        compiler_params=pltpu.CompilerParams(
            dimension_semantics=("parallel", "parallel"),
            vmem_limit_bytes=_VMEM_LIMIT_BYTES),
        cost_estimate=cost,
    )(*args)


# ----------------------------------------------------------------------------
# CrossConv wrapper
# ----------------------------------------------------------------------------
def fold_bn(gamma, beta, mean, var, eps=1e-5):
    # Inference-mode BatchNorm folded to scale/bias.
    scale = gamma / jnp.sqrt(var + eps)
    return scale, beta - mean * scale


def cross_conv(x_nchw, params, k=3, s=1, g=1, shortcut=False,
               compute_dtype=jnp.float32):
    """Forward pass of yolov5 CrossConv (inference-mode BN)."""
    if s != 1 or g != 1:
        raise NotImplementedError("only s=1, g=1 supported")  # TODO(synk)
    n, c1, h, w = x_nchw.shape
    w1, bn1, w2, bn2 = params["w1"], params["bn1"], params["w2"], params["bn2"]
    c_ = w1.shape[0]
    c2 = w2.shape[0]

    scale1, bias1 = fold_bn(*bn1)
    scale2, bias2 = fold_bn(*bn2)

    # torch (c_, c1, 1, k) -> (k*c1, c_);  torch (c2, c_, k, 1) -> (k*c_, c2)
    w1_mat = jnp.transpose(w1[:, :, 0, :], (2, 1, 0)).reshape(k * c1, c_)
    w2_mat = jnp.transpose(w2[:, :, :, 0], (2, 1, 0)).reshape(k * c_, c2)

    # One NCHW->NHWC transpose at the boundary (PyTorch interface is NCHW).
    # TODO(synk): the two boundary transposes could also be folded into the
    #             kernels (in-block transpose); kept in the wrapper for robustness.
    x_nhwc = jnp.transpose(x_nchw, (0, 2, 3, 1))

    # cv1: (1,k) conv along W on the free (N*H, W, C1) view of NHWC.
    y1 = _conv1d_w(x_nhwc.reshape(n * h, w, c1).astype(compute_dtype),
                   w1_mat.astype(compute_dtype), scale1, bias1, k,
                   out_dtype=compute_dtype)
    y1 = y1.reshape(n, h, w, c_)

    # cv2: (k,1) conv along H directly on NHWC (no intermediate transpose);
    # residual shortcut fused into the kernel epilogue.
    residual = x_nhwc if (shortcut and c1 == c2) else None
    y2 = _conv1d_h(y1, w2_mat.astype(compute_dtype), scale2, bias2, k,
                   residual=residual, out_dtype=x_nchw.dtype)

    return jnp.transpose(y2, (0, 3, 1, 2))   # NHWC -> NCHW


# ----------------------------------------------------------------------------
# Pure-JAX reference (correctness check only)
# ----------------------------------------------------------------------------
def _ref_conv_block(x, w_oihw, bn, padding):
    scale, bias = fold_bn(*bn)
    y = jax.lax.conv_general_dilated(
        x, w_oihw, window_strides=(1, 1), padding=padding,
        dimension_numbers=("NCHW", "OIHW", "NCHW"))
    y = y * scale[None, :, None, None] + bias[None, :, None, None]
    return y * jax.nn.sigmoid(y)


def cross_conv_ref(x, params, k=3, shortcut=False):
    pad = k // 2
    y = _ref_conv_block(x, params["w1"], params["bn1"], [(0, 0), (pad, pad)])
    y = _ref_conv_block(y, params["w2"], params["bn2"], [(pad, pad), (0, 0)])
    if shortcut and x.shape[1] == y.shape[1]:
        y = x + y
    return y


# ----------------------------------------------------------------------------
if __name__ == "__main__":
    # CrossConv(c1=4, c2=4, k=3, s=1, g=1, e=1.0) -> c_ = 4
    N, C1, H, W = 2, 4, 16, 16
    C2, K, E = 4, 3, 1.0
    C_ = int(C2 * E)

    key = jax.random.PRNGKey(0)
    ks = jax.random.split(key, 11)
    x = jax.random.normal(ks[0], (N, C1, H, W), jnp.float32)

    params = {
        # cv1: Conv2d(c1, c_, (1, k), bias=False) -> weight (c_, c1, 1, k)
        "w1": jax.random.normal(ks[1], (C_, C1, 1, K), jnp.float32) * 0.1,
        # BN: (gamma, beta, running_mean, running_var)
        "bn1": (jax.random.normal(ks[2], (C_,), jnp.float32) * 0.1 + 1.0,
                jax.random.normal(ks[3], (C_,), jnp.float32) * 0.1,
                jax.random.normal(ks[4], (C_,), jnp.float32) * 0.1,
                jax.random.uniform(ks[5], (C_,), jnp.float32, 0.5, 1.5)),
        # cv2: Conv2d(c_, c2, (k, 1), bias=False) -> weight (c2, c_, k, 1)
        "w2": jax.random.normal(ks[6], (C2, C_, K, 1), jnp.float32) * 0.1,
        "bn2": (jax.random.normal(ks[7], (C2,), jnp.float32) * 0.1 + 1.0,
                jax.random.normal(ks[8], (C2,), jnp.float32) * 0.1,
                jax.random.normal(ks[9], (C2,), jnp.float32) * 0.1,
                jax.random.uniform(ks[10], (C2,), jnp.float32, 0.5, 1.5)),
    }

    # f32 path, no shortcut (CrossConv default).
    out = jax.block_until_ready(cross_conv(x, params, k=K, shortcut=False))
    ref = jax.block_until_ready(cross_conv_ref(x, params, k=K, shortcut=False))
    assert out.shape == (N, C2, H, W), out.shape
    np.testing.assert_allclose(np.asarray(out), np.asarray(ref), rtol=1e-4, atol=1e-4)

    # f32 path with the fused residual shortcut (c1 == c2).
    out_sc = jax.block_until_ready(cross_conv(x, params, k=K, shortcut=True))
    ref_sc = jax.block_until_ready(cross_conv_ref(x, params, k=K, shortcut=True))
    np.testing.assert_allclose(np.asarray(out_sc), np.asarray(ref_sc),
                               rtol=1e-4, atol=1e-4)

    # bf16 MXU operands (recommended on v6e/v7x), f32 epilogue; looser tolerance.
    out_bf16 = jax.block_until_ready(
        cross_conv(x, params, k=K, shortcut=False, compute_dtype=jnp.bfloat16))
    np.testing.assert_allclose(np.asarray(out_bf16), np.asarray(ref),
                               rtol=5e-2, atol=5e-2)

    print("KERNEL_OK")
</pallas_src>

<mosaic_0001>
module attributes {stable_mosaic.version = 11 : i64} {
  func.func @_conv_w_kernel(%arg0: i32, %arg1: memref<32x16x4xf32, #tpu.memory_space<vmem>>, %arg2: memref<12x4xf32, #tpu.memory_space<vmem>>, %arg3: memref<1x1x4xf32, #tpu.memory_space<vmem>>, %arg4: memref<1x1x4xf32, #tpu.memory_space<vmem>>, %arg5: memref<32x16x4xf32, #tpu.memory_space<vmem>>, %arg6: memref<32x18x4xf32, #tpu.memory_space<vmem>>) attributes {dimension_semantics = [#tpu.dimension_semantics<parallel>], iteration_bounds = array<i64: 1>, scalar_prefetch = 0 : i64, scratch_operands = 1 : i64, tpu.core_type = #tpu.core_type<tc>, window_params = [{transform_indices = @transform_0, window_bounds = array<i64: 32, 16, 4>}, {pipeline_mode = #tpu.pipeline_mode<synchronous>, transform_indices = @transform_1, window_bounds = array<i64: 12, 4>}, {pipeline_mode = #tpu.pipeline_mode<synchronous>, transform_indices = @transform_2, window_bounds = array<i64: 1, 1, 4>}, {pipeline_mode = #tpu.pipeline_mode<synchronous>, transform_indices = @transform_3, window_bounds = array<i64: 1, 1, 4>}, {transform_indices = @transform_4, window_bounds = array<i64: 32, 16, 4>}]} {
    %cst = arith.constant 0.000000e+00 : f32
    %0 = vector.broadcast %cst : f32 to vector<32x1x4xf32>
    %c0 = arith.constant 0 : index
    %c0_0 = arith.constant 0 : index
    %c0_1 = arith.constant 0 : index
    %1 = vector.load %arg6[%c0, %c0_0, %c0_1] : memref<32x18x4xf32, #tpu.memory_space<vmem>>, vector<32x1x4xf32>
    tpu.vector_store %arg6[%c0, %c0_0, %c0_1], %0 {strides = array<i32>} : memref<32x18x4xf32, #tpu.memory_space<vmem>>, vector<32x1x4xf32>,
    %c0_2 = arith.constant 0 : index
    %c17 = arith.constant 17 : index
    %c0_3 = arith.constant 0 : index
    %2 = vector.load %arg6[%c0_2, %c17, %c0_3] : memref<32x18x4xf32, #tpu.memory_space<vmem>>, vector<32x1x4xf32>
    tpu.vector_store %arg6[%c0_2, %c17, %c0_3], %0 {strides = array<i32>} : memref<32x18x4xf32, #tpu.memory_space<vmem>>, vector<32x1x4xf32>,
    %c0_4 = arith.constant 0 : index
    %c0_5 = arith.constant 0 : index
    %c0_6 = arith.constant 0 : index
    %3 = vector.load %arg1[%c0_4, %c0_5, %c0_6] : memref<32x16x4xf32, #tpu.memory_space<vmem>>, vector<32x16x4xf32>
    %c0_7 = arith.constant 0 : index
    %c1 = arith.constant 1 : index
    %c0_8 = arith.constant 0 : index
    %4 = vector.load %arg6[%c0_7, %c1, %c0_8] : memref<32x18x4xf32, #tpu.memory_space<vmem>>, vector<32x16x4xf32>
    tpu.vector_store %arg6[%c0_7, %c1, %c0_8], %3 {strides = array<i32>} : memref<32x18x4xf32, #tpu.memory_space<vmem>>, vector<32x16x4xf32>,
    %c0_9 = arith.constant 0 : index
    %c0_10 = arith.constant 0 : index
    %c0_11 = arith.constant 0 : index
    %5 = vector.load %arg6[%c0_9, %c0_10, %c0_11] : memref<32x18x4xf32, #tpu.memory_space<vmem>>, vector<32x16x4xf32>
    %c0_12 = arith.constant 0 : index
    %c1_13 = arith.constant 1 : index
    %c0_14 = arith.constant 0 : index
    %6 = vector.load %arg6[%c0_12, %c1_13, %c0_14] : memref<32x18x4xf32, #tpu.memory_space<vmem>>, vector<32x16x4xf32>
    %c0_15 = arith.constant 0 : index
    %c2 = arith.constant 2 : index
    %c0_16 = arith.constant 0 : index
    %7 = vector.load %arg6[%c0_15, %c2, %c0_16] : memref<32x18x4xf32, #tpu.memory_space<vmem>>, vector<32x16x4xf32>
    %8 = tpu.concatenate %5, %6, %7 in 2 : vector<32x16x4xf32>, vector<32x16x4xf32>, vector<32x16x4xf32> -> vector<32x16x12xf32>
    %c0_17 = arith.constant 0 : index
    %c0_18 = arith.constant 0 : index
    %9 = vector.load %arg2[%c0_17, %c0_18] : memref<12x4xf32, #tpu.memory_space<vmem>>, vector<12x4xf32>
    %cst_19 = arith.constant dense<0.000000e+00> : vector<32x16x4xf32>
    %10 = tpu.matmul %8, %9, %cst_19 {dimension_numbers = #tpu.dot_dimension_numbers<[2], [0], [0, 1], [1], [0, 0, 0, 1, 1, 1], [], []>} : vector<32x16x12xf32>, vector<12x4xf32>, vector<32x16x4xf32> -> vector<32x16x4xf32>
    %c0_20 = arith.constant 0 : index
    %c0_21 = arith.constant 0 : index
    %c0_22 = arith.constant 0 : index
    %11 = vector.load %arg3[%c0_20, %c0_21, %c0_22] : memref<1x1x4xf32, #tpu.memory_space<vmem>>, vector<1x1x4xf32>
    %12 = vector.broadcast %11 : vector<1x1x4xf32> to vector<32x16x4xf32>
    %13 = arith.mulf %10, %12 : vector<32x16x4xf32>
    %c0_23 = arith.constant 0 : index
    %c0_24 = arith.constant 0 : index
    %c0_25 = arith.constant 0 : index
    %14 = vector.load %arg4[%c0_23, %c0_24, %c0_25] : memref<1x1x4xf32, #tpu.memory_space<vmem>>, vector<1x1x4xf32>
    %15 = vector.broadcast %14 : vector<1x1x4xf32> to vector<32x16x4xf32>
    %16 = arith.addf %13, %15 : vector<32x16x4xf32>
    %17 = arith.negf %16 : vector<32x16x4xf32>
    %18 = math.exp %17 : vector<32x16x4xf32>
    %cst_26 = arith.constant 1.000000e+00 : f32
    %19 = vector.broadcast %cst_26 : f32 to vector<32x16x4xf32>
    %20 = arith.addf %19, %18 : vector<32x16x4xf32>
    %21 = arith.divf %19, %20 : vector<32x16x4xf32>
    %22 = arith.mulf %16, %21 : vector<32x16x4xf32>
    %c0_27 = arith.constant 0 : index
    %c0_28 = arith.constant 0 : index
    %c0_29 = arith.constant 0 : index
    %23 = vector.load %arg5[%c0_27, %c0_28, %c0_29] : memref<32x16x4xf32, #tpu.memory_space<vmem>>, vector<32x16x4xf32>
    tpu.vector_store %arg5[%c0_27, %c0_28, %c0_29], %22 {strides = array<i32>} : memref<32x16x4xf32, #tpu.memory_space<vmem>>, vector<32x16x4xf32>,
    return
  }
  func.func @transform_0(%arg0: i32) -> (i32, i32, i32) {
    %c0_i32 = arith.constant 0 : i32
    %c0_i32_0 = arith.constant 0 : i32
    %c0_i32_1 = arith.constant 0 : i32
    return %arg0, %c0_i32, %c0_i32_0 : i32, i32, i32
  }
  func.func @transform_1(%arg0: i32) -> (i32, i32) {
    %c0_i32 = arith.constant 0 : i32
    %c0_i32_0 = arith.constant 0 : i32
    %c0_i32_1 = arith.constant 0 : i32
    return %c0_i32, %c0_i32_0 : i32, i32
  }
  func.func @transform_2(%arg0: i32) -> (i32, i32, i32) {
    %c0_i32 = arith.constant 0 : i32
    %c0_i32_0 = arith.constant 0 : i32
    %c0_i32_1 = arith.constant 0 : i32
    %c0_i32_2 = arith.constant 0 : i32
    return %c0_i32, %c0_i32_0, %c0_i32_1 : i32, i32, i32
  }
  func.func @transform_3(%arg0: i32) -> (i32, i32, i32) {
    %c0_i32 = arith.constant 0 : i32
    %c0_i32_0 = arith.constant 0 : i32
    %c0_i32_1 = arith.constant 0 : i32
    %c0_i32_2 = arith.constant 0 : i32
    return %c0_i32, %c0_i32_0, %c0_i32_1 : i32, i32, i32
  }
  func.func @transform_4(%arg0: i32) -> (i32, i32, i32) {
    %c0_i32 = arith.constant 0 : i32
    %c0_i32_0 = arith.constant 0 : i32
    %c0_i32_1 = arith.constant 0 : i32
    return %arg0, %c0_i32, %c0_i32_0 : i32, i32, i32
  }
}

</mosaic_0001>

<bundles_post_ra>
// kernel: tpu_custom_call.1
= control target key start
LH: loop header
LB: loop body
LE: loop exit
PB: predicated region body
PF: predicated region fallthrough
CT: control target
= control target key end

     0   :  { %vm146_vm0 = vcmask 31744   ;;  %vm17_vm1 = vcmask 24576   ;;  %v2853_v3 = vmov 0.0   ;;  %s2854_s11 = smov 4   ;;  %s2855_s12 = smov 8   ;;  %vm1239_vm2 = vcmask 1043456   ;;  %s4257_s0 = inlined_call_operand.vmem [shape: f32[32,16,4], index: 0, kind: input, shape index: {}]   ;;  %s4258_s1 = inlined_call_operand.vmem [shape: f32[12,4], index: 1, kind: input, shape index: {}]   ;;  %s4259_s2 = inlined_call_operand.vmem [shape: f32[1,1,4], index: 2, kind: input, shape index: {}]   ;;  %s4260_s3 = inlined_call_operand.vmem [shape: f32[1,1,4], index: 3, kind: input, shape index: {}]   ;;  %s4261_s4 = inlined_call_operand.vmem [shape: f32[32,16,4], index: 4, kind: output, shape index: {}]  }
   0x1   :  { %v2885_v0 = vld [vmem:[%s4257_s0 + $0x8] sm:$0xff]  ;;  %v2890_v1 = vld [vmem:[%s4257_s0] sm:$0xff]  ;;  %66 = vst.msk [vmem:[#allocation2 + $0x191] sm:$0x1] %vm17_vm1, %v2853_v3  ;;  %18 = vst.msk [vmem:[#allocation2] sm:$0x1] %vm17_vm1, %v2853_v3 }
   0x2   :  { %v2895_v2 = vld [vmem:[%s4257_s0 + $0x108] sm:$0xff]  ;;  %19 = vst.msk [vmem:[#allocation2 + $0x18] sm:$0x1] %vm17_vm1, %v2853_v3  ;;  %20 = vst.msk [vmem:[#allocation2 + $0x30] sm:$0x1] %vm17_vm1, %v2853_v3  ;;  %v114_v4 = vld [vmem:[%s4257_s0 + $0x100] sm:$0xff] }
   0x3   :  { %21 = vst.msk [vmem:[#allocation2 + $0x48] sm:$0x1] %vm17_vm1, %v2853_v3  ;;  %22 = vst.msk [vmem:[#allocation2 + $0x60] sm:$0x1] %vm17_vm1, %v2853_v3  ;;  %v116_v5 = vld [vmem:[%s4257_s0 + $0x110] sm:$0xff]  ;;  %v117_v7 = vld [vmem:[%s4257_s0 + $0x118] sm:$0xff] }
   0x4   :  { %23 = vst.msk [vmem:[#allocation2 + $0x78] sm:$0x1] %vm17_vm1, %v2853_v3  ;;  %24 = vst.msk [vmem:[#allocation2 + $0x90] sm:$0x1] %vm17_vm1, %v2853_v3  ;;  %v84_v6 = vld [vmem:[%s4257_s0 + $0x10] sm:$0xff]  ;;  %v85_v8 = vld [vmem:[%s4257_s0 + $0x18] sm:$0xff] }
   0x5   :  { %25 = vst.msk [vmem:[#allocation2 + $0xa8] sm:$0x1] %vm17_vm1, %v2853_v3  ;;  %26 = vst.msk [vmem:[#allocation2 + $0xc0] sm:$0x1] %vm17_vm1, %v2853_v3  ;;  %v118_v9 = vld [vmem:[%s4257_s0 + $0x120] sm:$0xff]  ;;  %v119_v11 = vld [vmem:[%s4257_s0 + $0x128] sm:$0xff] }
   0x6   :  { %27 = vst.msk [vmem:[#allocation2 + $0xd8] sm:$0x1] %vm17_vm1, %v2853_v3  ;;  %28 = vst.msk [vmem:[#allocation2 + $0xf0] sm:$0x1] %vm17_vm1, %v2853_v3  ;;  %v86_v10 = vld [vmem:[%s4257_s0 + $0x20] sm:$0xff]  ;;  %v87_v12 = vld [vmem:[%s4257_s0 + $0x28] sm:$0xff] }
   0x7   :  { %29 = vst.msk [vmem:[#allocation2 + $0x108] sm:$0x1] %vm17_vm1, %v2853_v3  ;;  %30 = vst.msk [vmem:[#allocation2 + $0x120] sm:$0x1] %vm17_vm1, %v2853_v3  ;;  %v120_v13 = vld [vmem:[%s4257_s0 + $0x130] sm:$0xff]  ;;  %v121_v15 = vld [vmem:[%s4257_s0 + $0x138] sm:$0xff] }
   0x8   :  { %31 = vst.msk [vmem:[#allocation2 + $0x138] sm:$0x1] %vm17_vm1, %v2853_v3  ;;  %32 = vst.msk [vmem:[#allocation2 + $0x150] sm:$0x1] %vm17_vm1, %v2853_v3  ;;  %v88_v14 = vld [vmem:[%s4257_s0 + $0x30] sm:$0xff]  ;;  %v89_v16 = vld [vmem:[%s4257_s0 + $0x38] sm:$0xff] }
   0x9   :  { %33 = vst.msk [vmem:[#allocation2 + $0x168] sm:$0x1] %vm17_vm1, %v2853_v3  ;;  %34 = vst.msk [vmem:[#allocation2 + $0x180] sm:$0x1] %vm17_vm1, %v2853_v3  ;;  %v122_v17 = vld [vmem:[%s4257_s0 + $0x140] sm:$0xff]  ;;  %v123_v19 = vld [vmem:[%s4257_s0 + $0x148] sm:$0xff] }
   0xa   :  { %35 = vst.msk [vmem:[#allocation2 + $0x198] sm:$0x1] %vm17_vm1, %v2853_v3  ;;  %36 = vst.msk [vmem:[#allocation2 + $0x1b0] sm:$0x1] %vm17_vm1, %v2853_v3  ;;  %v90_v18 = vld [vmem:[%s4257_s0 + $0x40] sm:$0xff]  ;;  %v91_v20 = vld [vmem:[%s4257_s0 + $0x48] sm:$0xff] }
   0xb   :  { %37 = vst.msk [vmem:[#allocation2 + $0x1c8] sm:$0x1] %vm17_vm1, %v2853_v3  ;;  %38 = vst.msk [vmem:[#allocation2 + $0x1e0] sm:$0x1] %vm17_vm1, %v2853_v3  ;;  %v124_v21 = vld [vmem:[%s4257_s0 + $0x150] sm:$0xff]  ;;  %v125_v23 = vld [vmem:[%s4257_s0 + $0x158] sm:$0xff] }
   0xc   :  { %39 = vst.msk [vmem:[#allocation2 + $0x1f8] sm:$0x1] %vm17_vm1, %v2853_v3  ;;  %40 = vst.msk [vmem:[#allocation2 + $0x210] sm:$0x1] %vm17_vm1, %v2853_v3  ;;  %v92_v22 = vld [vmem:[%s4257_s0 + $0x50] sm:$0xff]  ;;  %v93_v24 = vld [vmem:[%s4257_s0 + $0x58] sm:$0xff] }
   0xd   :  { %41 = vst.msk [vmem:[#allocation2 + $0x228] sm:$0x1] %vm17_vm1, %v2853_v3  ;;  %42 = vst.msk [vmem:[#allocation2 + $0x240] sm:$0x1] %vm17_vm1, %v2853_v3  ;;  %v126_v35 = vld [vmem:[%s4257_s0 + $0x160] sm:$0xff]  ;;  %v127_v37 = vld [vmem:[%s4257_s0 + $0x168] sm:$0xff] }
   0xe   :  { %43 = vst.msk [vmem:[#allocation2 + $0x258] sm:$0x1] %vm17_vm1, %v2853_v3  ;;  %44 = vst.msk [vmem:[#allocation2 + $0x270] sm:$0x1] %vm17_vm1, %v2853_v3  ;;  %v94_v36 = vld [vmem:[%s4257_s0 + $0x60] sm:$0xff]  ;;  %v95_v39 = vld [vmem:[%s4257_s0 + $0x68] sm:$0xff] }
   0xf   :  { %45 = vst.msk [vmem:[#allocation2 + $0x288] sm:$0x1] %vm17_vm1, %v2853_v3  ;;  %46 = vst.msk [vmem:[#allocation2 + $0x2a0] sm:$0x1] %vm17_vm1, %v2853_v3  ;;  %v128_v40 = vld [vmem:[%s4257_s0 + $0x170] sm:$0xff]  ;;  %v129_v43 = vld [vmem:[%s4257_s0 + $0x178] sm:$0xff] }
  0x10   :  { %47 = vst.msk [vmem:[#allocation2 + $0x2b8] sm:$0x1] %vm17_vm1, %v2853_v3  ;;  %48 = vst.msk [vmem:[#allocation2 + $0x2d0] sm:$0x1] %vm17_vm1, %v2853_v3  ;;  %v96_v42 = vld [vmem:[%s4257_s0 + $0x70] sm:$0xff]  ;;  %v97_v44 = vld [vmem:[%s4257_s0 + $0x78] sm:$0xff] }
  0x11   :  { %49 = vst.msk [vmem:[#allocation2 + $0x2e8] sm:$0x1] %vm17_vm1, %v2853_v3  ;;  %50 = vst.msk [vmem:[#allocation2 + $0x11] sm:$0x1] %vm17_vm1, %v2853_v3  ;;  %v1044_v45 = vld [vmem:[%s4258_s1] sm:$0xff]  ;;  %vm2856_vm3 = vmmov 1  }
  0x12   :  { %51 = vst.msk [vmem:[#allocation2 + $0x29] sm:$0x1] %vm17_vm1, %v2853_v3  ;;  %52 = vst.msk [vmem:[#allocation2 + $0x41] sm:$0x1] %vm17_vm1, %v2853_v3  ;;  %v1045_v46 = vld [vmem:[%s4258_s1 + $0x8] sm:$0xf] }
  0x13   :  { %53 = vst.msk [vmem:[#allocation2 + $0x59] sm:$0x1] %vm17_vm1, %v2853_v3  ;;  %54 = vst.msk [vmem:[#allocation2 + $0x71] sm:$0x1] %vm17_vm1, %v2853_v3  ;;  %v2583_v49 = vpack.c.bf16 %v1045_v46, %v1044_v45  ;;  %v130_v50 = vld [vmem:[%s4257_s0 + $0x180] sm:$0xff]  ;;  %v131_v53 = vld [vmem:[%s4257_s0 + $0x188] sm:$0xff] }
  0x14   :  { %55 = vst.msk [vmem:[#allocation2 + $0x89] sm:$0x1] %vm17_vm1, %v2853_v3  ;;  %56 = vst.msk [vmem:[#allocation2 + $0xa1] sm:$0x1] %vm17_vm1, %v2853_v3  ;;  %v98_v51 = vld [vmem:[%s4257_s0 + $0x80] sm:$0xff]  ;;  %v99_v54 = vld [vmem:[%s4257_s0 + $0x88] sm:$0xff] }
  0x15   :  { %57 = vst.msk [vmem:[#allocation2 + $0xb9] sm:$0x1] %vm17_vm1, %v2853_v3  ;;  %58 = vst.msk [vmem:[#allocation2 + $0xd1] sm:$0x1] %vm17_vm1, %v2853_v3  ;;  %v132_v55 = vld [vmem:[%s4257_s0 + $0x190] sm:$0xff]  ;;  %v133_v61 = vld [vmem:[%s4257_s0 + $0x198] sm:$0xff] }
  0x16   :  { %59 = vst.msk [vmem:[#allocation2 + $0xe9] sm:$0x1] %vm17_vm1, %v2853_v3  ;;  %60 = vst.msk [vmem:[#allocation2 + $0x101] sm:$0x1] %vm17_vm1, %v2853_v3  ;;  %v100_v60 = vld [vmem:[%s4257_s0 + $0x90] sm:$0xff]  ;;  %v101_v62 = vld [vmem:[%s4257_s0 + $0x98] sm:$0xff] }
  0x17   :  { %61 = vst.msk [vmem:[#allocation2 + $0x119] sm:$0x1] %vm17_vm1, %v2853_v3  ;;  %62 = vst.msk [vmem:[#allocation2 + $0x131] sm:$0x1] %vm17_vm1, %v2853_v3  ;;  %v143_v47 = vld [vmem:[%s4257_s0 + $0x1e8] sm:$0xff]  ;;  %vm979_vm5 = vcmask 64512  }
  0x18   :  { %63 = vst.msk [vmem:[#allocation2 + $0x149] sm:$0x1] %vm17_vm1, %v2853_v3  ;;  %64 = vst.msk [vmem:[#allocation2 + $0x161] sm:$0x1] %vm17_vm1, %v2853_v3  ;;  %vm1046_vm6 = vcmask 97280  }
  0x19   :  { %65 = vst.msk [vmem:[#allocation2 + $0x179] sm:$0x1] %vm17_vm1, %v2853_v3  ;;  %67 = vst.msk [vmem:[#allocation2 + $0x1a9] sm:$0x1] %vm17_vm1, %v2853_v3 }
  0x1a   :  { %68 = vst.msk [vmem:[#allocation2 + $0x1c1] sm:$0x1] %vm17_vm1, %v2853_v3  ;;  %69 = vst.msk [vmem:[#allocation2 + $0x1d9] sm:$0x1] %vm17_vm1, %v2853_v3 }
  0x1b   :  { %70 = vst.msk [vmem:[#allocation2 + $0x1f1] sm:$0x1] %vm17_vm1, %v2853_v3  ;;  %71 = vst.msk [vmem:[#allocation2 + $0x209] sm:$0x1] %vm17_vm1, %v2853_v3 }
  0x1c   :  { %72 = vst.msk [vmem:[#allocation2 + $0x221] sm:$0x1] %vm17_vm1, %v2853_v3  ;;  %73 = vst.msk [vmem:[#allocation2 + $0x239] sm:$0x1] %vm17_vm1, %v2853_v3 }
  0x1d   :  { %74 = vst.msk [vmem:[#allocation2 + $0x251] sm:$0x1] %vm17_vm1, %v2853_v3  ;;  %75 = vst.msk [vmem:[#allocation2 + $0x269] sm:$0x1] %vm17_vm1, %v2853_v3 }
  0x1e   :  { %76 = vst.msk [vmem:[#allocation2 + $0x281] sm:$0x1] %vm17_vm1, %v2853_v3  ;;  %77 = vst.msk [vmem:[#allocation2 + $0x299] sm:$0x1] %vm17_vm1, %v2853_v3 }
  0x1f   :  { %78 = vst.msk [vmem:[#allocation2 + $0x2b1] sm:$0x1] %vm17_vm1, %v2853_v3  ;;  %79 = vst.msk [vmem:[#allocation2 + $0x2c9] sm:$0x1] %vm17_vm1, %v2853_v3 }
  0x20   :  { %80 = vst.msk [vmem:[#allocation2 + $0x2e1] sm:$0x1] %vm17_vm1, %v2853_v3  ;;  %81 = vst.msk [vmem:[#allocation2 + $0x2f9] sm:$0x1] %vm17_vm1, %v2853_v3  ;;  %v135_v3 = vld [vmem:[%s4257_s0 + $0x1a8] sm:$0xff] }
  0x21   :  { %148 = vst.msk [vmem:[#allocation2 + $0x9] sm:$0xff] %vm146_vm0, %v2885_v0  ;;  %147 = vst.msk [vmem:[#allocation2 + $0x1] sm:$0xff] %vm146_vm0, %v2890_v1  ;;  %v134_v1 = vld [vmem:[%s4257_s0 + $0x1a0] sm:$0xff] }
  0x22   :  { %180 = vst.msk [vmem:[#allocation2 + $0x189] sm:$0xff] %vm146_vm0, %v2895_v2  ;;  %179 = vst.msk [vmem:[#allocation2 + $0x181] sm:$0xff] %vm146_vm0, %v114_v4  ;;  %v102_v2 = vld [vmem:[%s4257_s0 + $0xa0] sm:$0xff]  ;;  %v103_v4 = vld [vmem:[%s4257_s0 + $0xa8] sm:$0xff] }
  0x23   :  { %181 = vst.msk [vmem:[#allocation2 + $0x199] sm:$0xff] %vm146_vm0, %v116_v5  ;;  %149 = vst.msk [vmem:[#allocation2 + $0x19] sm:$0xff] %vm146_vm0, %v84_v6 }
  0x24   :  { %182 = vst.msk [vmem:[#allocation2 + $0x1a1] sm:$0xff] %vm146_vm0, %v117_v7  ;;  %150 = vst.msk [vmem:[#allocation2 + $0x21] sm:$0xff] %vm146_vm0, %v85_v8 }
  0x25   :  { %183 = vst.msk [vmem:[#allocation2 + $0x1b1] sm:$0xff] %vm146_vm0, %v118_v9  ;;  %151 = vst.msk [vmem:[#allocation2 + $0x31] sm:$0xff] %vm146_vm0, %v86_v10 }
  0x26   :  { %184 = vst.msk [vmem:[#allocation2 + $0x1b9] sm:$0xff] %vm146_vm0, %v119_v11  ;;  %152 = vst.msk [vmem:[#allocation2 + $0x39] sm:$0xff] %vm146_vm0, %v87_v12  ;;  %v136_v11 = vld [vmem:[%s4257_s0 + $0x1b0] sm:$0xff] }
  0x27   :  { %185 = vst.msk [vmem:[#allocation2 + $0x1c9] sm:$0xff] %vm146_vm0, %v120_v13  ;;  %153 = vst.msk [vmem:[#allocation2 + $0x49] sm:$0xff] %vm146_vm0, %v88_v14  ;;  %v104_v12 = vld [vmem:[%s4257_s0 + $0xb0] sm:$0xff]  ;;  %v137_v13 = vld [vmem:[%s4257_s0 + $0x1b8] sm:$0xff] }
  0x28   :  { %186 = vst.msk [vmem:[#allocation2 + $0x1d1] sm:$0xff] %vm146_vm0, %v121_v15  ;;  %154 = vst.msk [vmem:[#allocation2 + $0x51] sm:$0xff] %vm146_vm0, %v89_v16  ;;  %v276_v25 = vld [vmem:[#allocation2 + $0x9] sm:$0xff]  ;;  %v275_v26 = vld [vmem:[#allocation2 + $0x1] sm:$0xff] }
  0x29   :  { %187 = vst.msk [vmem:[#allocation2 + $0x1e1] sm:$0xff] %vm146_vm0, %v122_v17  ;;  %155 = vst.msk [vmem:[#allocation2 + $0x61] sm:$0xff] %vm146_vm0, %v90_v18  ;;  %469 = vrot.lane.b32.xlu1 %v276_v25, %s2854_s11  ;;  %467 = vrot.lane.b32.xlu0 %v275_v26, %s2854_s11  ;;  %v308_v27 = vld [vmem:[#allocation2 + $0x189] sm:$0xff]  ;;  %v307_v28 = vld [vmem:[#allocation2 + $0x181] sm:$0xff] }
  0x2a   :  { %188 = vst.msk [vmem:[#allocation2 + $0x1e9] sm:$0xff] %vm146_vm0, %v123_v19  ;;  %156 = vst.msk [vmem:[#allocation2 + $0x69] sm:$0xff] %vm146_vm0, %v91_v20  ;;  %v371_v29 = vld [vmem:[#allocation2 + $0x182] sm:$0xff]  ;;  %v372_v31 = vld [vmem:[#allocation2 + $0x18a] sm:$0xff] }
  0x2b   :  { %189 = vst.msk [vmem:[#allocation2 + $0x1f9] sm:$0xff] %vm146_vm0, %v124_v21  ;;  %157 = vst.msk [vmem:[#allocation2 + $0x79] sm:$0xff] %vm146_vm0, %v92_v22  ;;  %v339_v30 = vld [vmem:[#allocation2 + $0x2] sm:$0xff]  ;;  %v340_v32 = vld [vmem:[#allocation2 + $0xa] sm:$0xff] }
  0x2c   :  { %190 = vst.msk [vmem:[#allocation2 + $0x201] sm:$0xff] %vm146_vm0, %v125_v23  ;;  %158 = vst.msk [vmem:[#allocation2 + $0x81] sm:$0xff] %vm146_vm0, %v93_v24  ;;  %v309_v33 = vld [vmem:[#allocation2 + $0x199] sm:$0xff]  ;;  %v310_v38 = vld [vmem:[#allocation2 + $0x1a1] sm:$0xff] }
  0x2d   :  { %533 = vrot.lane.b32.xlu1 %v308_v27, %s2854_s11  ;;  %531 = vrot.lane.b32.xlu0 %v307_v28, %s2854_s11  ;;  %v277_v34 = vld [vmem:[#allocation2 + $0x19] sm:$0xff]  ;;  %191 = vst.msk [vmem:[#allocation2 + $0x211] sm:$0xff] %vm146_vm0, %v126_v35  ;;  %159 = vst.msk [vmem:[#allocation2 + $0x91] sm:$0xff] %vm146_vm0, %v94_v36  ;;  %v278_v41 = vld [vmem:[#allocation2 + $0x21] sm:$0xff] }
  0x2e   :  { %192 = vst.msk [vmem:[#allocation2 + $0x219] sm:$0xff] %vm146_vm0, %v127_v37  ;;  %160 = vst.msk [vmem:[#allocation2 + $0x99] sm:$0xff] %vm146_vm0, %v95_v39  ;;  %v373_v48 = vld [vmem:[#allocation2 + $0x19a] sm:$0xff]  ;;  %v374_v56 = vld [vmem:[#allocation2 + $0x1a2] sm:$0xff] }
  0x2f   :  { %193 = vst.msk [vmem:[#allocation2 + $0x229] sm:$0xff] %vm146_vm0, %v128_v40  ;;  %161 = vst.msk [vmem:[#allocation2 + $0xa9] sm:$0xff] %vm146_vm0, %v96_v42  ;;  %v341_v52 = vld [vmem:[#allocation2 + $0x1a] sm:$0xff]  ;;  %v342_v57 = vld [vmem:[#allocation2 + $0x22] sm:$0xff] }
  0x30   :  { %194 = vst.msk [vmem:[#allocation2 + $0x231] sm:$0xff] %vm146_vm0, %v129_v43  ;;  %162 = vst.msk [vmem:[#allocation2 + $0xb1] sm:$0xff] %vm146_vm0, %v97_v44  ;;  %v311_v58 = vld [vmem:[#allocation2 + $0x1b1] sm:$0xff]  ;;  %v312_v63 = vld [vmem:[#allocation2 + $0x1b9] sm:$0xff] }
  0x31   :  { %787 = vrot.lane.b32.xlu1 %v371_v29, %s2855_s12  ;;  %723 = vrot.lane.b32.xlu0 %v339_v30, %s2855_s12  ;;  %vm3163_vm4 = vmpackc.low %vm1239_vm2, %vm2856_vm3  ;;  %195 = vst.msk [vmem:[#allocation2 + $0x241] sm:$0xff] %vm146_vm0, %v130_v50  ;;  %v279_v59 = vld [vmem:[#allocation2 + $0x31] sm:$0xff]  ;;  %v280_v0 = vld [vmem:[#allocation2 + $0x39] sm:$0xff] }
  0x32   :  { %163 = vst.msk [vmem:[#allocation2 + $0xc1] sm:$0xff] %vm146_vm0, %v98_v51  ;;  %2585 = vmatprep.subr.msk.bf16.mxu0 %vm3163_vm4, %v2583_v49  ;;  %2589 = vmatprep.subr.msk.bf16.mxu1 %vm3163_vm4, %v2583_v49  ;;  %196 = vst.msk [vmem:[#allocation2 + $0x249] sm:$0xff] %vm146_vm0, %v131_v53  ;;  %v375_v5 = vld [vmem:[#allocation2 + $0x1b2] sm:$0xff]  ;;  %v376_v7 = vld [vmem:[#allocation2 + $0x1ba] sm:$0xff] }
  0x33   :  { %164 = vst.msk [vmem:[#allocation2 + $0xc9] sm:$0xff] %vm146_vm0, %v99_v54  ;;  %2588 = vmatpush3.bf16.msk.msra.mxu0 %vm3163_vm4, %v2583_v49  ;;  %2590 = vmatpush3.bf16.msk.msra.mxu1 %vm3163_vm4, %v2583_v49  ;;  %197 = vst.msk [vmem:[#allocation2 + $0x259] sm:$0xff] %vm146_vm0, %v132_v55  ;;  %v343_v6 = vld [vmem:[#allocation2 + $0x32] sm:$0xff]  ;;  %v344_v8 = vld [vmem:[#allocation2 + $0x3a] sm:$0xff] }
  0x34   :  { %165 = vst.msk [vmem:[#allocation2 + $0xd9] sm:$0xff] %vm146_vm0, %v100_v60  ;;  %198 = vst.msk [vmem:[#allocation2 + $0x261] sm:$0xff] %vm146_vm0, %v133_v61  ;;  %v313_v9 = vld [vmem:[#allocation2 + $0x1c9] sm:$0xff]  ;;  %v105_v14 = vld [vmem:[%s4257_s0 + $0xb8] sm:$0xff] }
  0x35   :  { %789 = vrot.lane.b32.xlu1 %v372_v31, %s2855_s12  ;;  %725 = vrot.lane.b32.xlu0 %v340_v32, %s2855_s12  ;;  %166 = vst.msk [vmem:[#allocation2 + $0xe1] sm:$0xff] %vm146_vm0, %v101_v62  ;;  %199 = vst.msk [vmem:[#allocation2 + $0x271] sm:$0xff] %vm146_vm0, %v134_v1  ;;  %v281_v10 = vld [vmem:[#allocation2 + $0x49] sm:$0xff]  ;;  %v314_v15 = vld [vmem:[#allocation2 + $0x1d1] sm:$0xff] }
  0x36   :  { %167 = vst.msk [vmem:[#allocation2 + $0xf1] sm:$0xff] %vm146_vm0, %v102_v2  ;;  %200 = vst.msk [vmem:[#allocation2 + $0x279] sm:$0xff] %vm146_vm0, %v135_v3  ;;  %v282_v16 = vld [vmem:[#allocation2 + $0x51] sm:$0xff]  ;;  %v138_v19 = vld [vmem:[%s4257_s0 + $0x1c0] sm:$0xff] }
  0x37   :  { %168 = vst.msk [vmem:[#allocation2 + $0xf9] sm:$0xff] %vm146_vm0, %v103_v4  ;;  %201 = vst.msk [vmem:[#allocation2 + $0x289] sm:$0xff] %vm146_vm0, %v136_v11  ;;  %v377_v17 = vld [vmem:[#allocation2 + $0x1ca] sm:$0xff]  ;;  %v106_v20 = vld [vmem:[%s4257_s0 + $0xc0] sm:$0xff] }
  0x38   :  { %169 = vst.msk [vmem:[#allocation2 + $0x109] sm:$0xff] %vm146_vm0, %v104_v12  ;;  %202 = vst.msk [vmem:[#allocation2 + $0x291] sm:$0xff] %vm146_vm0, %v137_v13  ;;  %v345_v18 = vld [vmem:[#allocation2 + $0x4a] sm:$0xff]  ;;  %v378_v21 = vld [vmem:[#allocation2 + $0x1d2] sm:$0xff] }
  0x39   :  { %535 = vrot.lane.b32.xlu1 %v309_v33, %s2854_s11  ;;  %471 = vrot.lane.b32.xlu0 %v277_v34, %s2854_s11  ;;  %170 = vst.msk [vmem:[#allocation2 + $0x111] sm:$0xff] %vm146_vm0, %v105_v14  ;;  %v346_v22 = vld [vmem:[#allocation2 + $0x52] sm:$0xff]  ;;  %203 = vst.msk [vmem:[#allocation2 + $0x2a1] sm:$0xff] %vm146_vm0, %v138_v19  ;;  %v139_v23 = vld [vmem:[%s4257_s0 + $0x1c8] sm:$0xff] }
  0x3a   :  { %171 = vst.msk [vmem:[#allocation2 + $0x121] sm:$0xff] %vm146_vm0, %v106_v20  ;;  %v107_v24 = vld [vmem:[%s4257_s0 + $0xc8] sm:$0xff]  ;;  %204 = vst.msk [vmem:[#allocation2 + $0x2a9] sm:$0xff] %vm146_vm0, %v139_v23  ;;  %v140_v31 = vld [vmem:[%s4257_s0 + $0x1d0] sm:$0xff] }
  0x3b   :  { %v315_v25 = vld [vmem:[#allocation2 + $0x1e1] sm:$0xff]  ;;  %172 = vst.msk [vmem:[#allocation2 + $0x129] sm:$0xff] %vm146_vm0, %v107_v24  ;;  %v316_v27 = vld [vmem:[#allocation2 + $0x1e9] sm:$0xff]  ;;  %205 = vst.msk [vmem:[#allocation2 + $0x2b9] sm:$0xff] %vm146_vm0, %v140_v31 }
  0x3c   :  { %v283_v26 = vld [vmem:[#allocation2 + $0x61] sm:$0xff]  ;;  %v284_v28 = vld [vmem:[#allocation2 + $0x69] sm:$0xff]  ;;  %v141_v35 = vld [vmem:[%s4257_s0 + $0x1d8] sm:$0xff]  ;;  %208 = vst.msk [vmem:[#allocation2 + $0x2d9] sm:$0xff] %vm146_vm0, %v143_v47 }
  0x3d   :  { %537 = vrot.lane.b32.xlu1 %v310_v38, %s2854_s11  ;;  %473 = vrot.lane.b32.xlu0 %v278_v41, %s2854_s11  ;;  %v379_v29 = vld [vmem:[#allocation2 + $0x1e2] sm:$0xff]  ;;  %v108_v32 = vld [vmem:[%s4257_s0 + $0xd0] sm:$0xff]  ;;  %v109_v36 = vld [vmem:[%s4257_s0 + $0xd8] sm:$0xff]  ;;  %206 = vst.msk [vmem:[#allocation2 + $0x2c1] sm:$0xff] %vm146_vm0, %v141_v35 }
  0x3e   :  { %v347_v30 = vld [vmem:[#allocation2 + $0x62] sm:$0xff]  ;;  %v380_v33 = vld [vmem:[#allocation2 + $0x1ea] sm:$0xff]  ;;  %173 = vst.msk [vmem:[#allocation2 + $0x139] sm:$0xff] %vm146_vm0, %v108_v32  ;;  %v317_v37 = vld [vmem:[#allocation2 + $0x1f9] sm:$0xff] }
  0x3f   :  { %v348_v34 = vld [vmem:[#allocation2 + $0x6a] sm:$0xff]  ;;  %v285_v38 = vld [vmem:[#allocation2 + $0x79] sm:$0xff]  ;;  %174 = vst.msk [vmem:[#allocation2 + $0x141] sm:$0xff] %vm146_vm0, %v109_v36  ;;  %v318_v39 = vld [vmem:[#allocation2 + $0x201] sm:$0xff] }
  0x40   :  { %v286_v40 = vld [vmem:[#allocation2 + $0x81] sm:$0xff]  ;;  %v319_v49 = vld [vmem:[#allocation2 + $0x211] sm:$0xff]  ;;  %v320_v51 = vld [vmem:[#allocation2 + $0x219] sm:$0xff] }
  0x41   :  { %791 = vrot.lane.b32.xlu1 %v373_v48, %s2855_s12  ;;  %727 = vrot.lane.b32.xlu0 %v341_v52, %s2855_s12  ;;  %v381_v41 = vld [vmem:[#allocation2 + $0x1fa] sm:$0xff]  ;;  %v382_v45 = vld [vmem:[#allocation2 + $0x202] sm:$0xff]  ;;  %v287_v50 = vld [vmem:[#allocation2 + $0x91] sm:$0xff] }
  0x42   :  { %v349_v42 = vld [vmem:[#allocation2 + $0x7a] sm:$0xff]  ;;  %v350_v46 = vld [vmem:[#allocation2 + $0x82] sm:$0xff]  ;;  %v383_v53 = vld [vmem:[#allocation2 + $0x212] sm:$0xff] }
  0x43   :  { %v142_v43 = vld [vmem:[%s4257_s0 + $0x1e0] sm:$0xff]  ;;  %v111_v48 = vld [vmem:[%s4257_s0 + $0xe8] sm:$0xff]  ;;  %v351_v54 = vld [vmem:[#allocation2 + $0x92] sm:$0xff] }
  0x44   :  { %v110_v44 = vld [vmem:[%s4257_s0 + $0xe0] sm:$0xff]  ;;  %207 = vst.msk [vmem:[#allocation2 + $0x2d1] sm:$0xff] %vm146_vm0, %v142_v43  ;;  %176 = vst.msk [vmem:[#allocation2 + $0x159] sm:$0xff] %vm146_vm0, %v111_v48  ;;  %v144_v55 = vld [vmem:[%s4257_s0 + $0x1f0] sm:$0xff] }
  0x45   :  { %793 = vrot.lane.b32.xlu1 %v374_v56, %s2855_s12  ;;  %729 = vrot.lane.b32.xlu0 %v342_v57, %s2855_s12  ;;  %175 = vst.msk [vmem:[#allocation2 + $0x151] sm:$0xff] %vm146_vm0, %v110_v44  ;;  %v288_v52 = vld [vmem:[#allocation2 + $0x99] sm:$0xff]  ;;  %v112_v56 = vld [vmem:[%s4257_s0 + $0xf0] sm:$0xff]  ;;  %209 = vst.msk [vmem:[#allocation2 + $0x2e9] sm:$0xff] %vm146_vm0, %v144_v55 }
  0x46   :  { %v384_v57 = vld [vmem:[#allocation2 + $0x21a] sm:$0xff]  ;;  %177 = vst.msk [vmem:[#allocation2 + $0x169] sm:$0xff] %vm146_vm0, %v112_v56  ;;  %v321_v61 = vld [vmem:[#allocation2 + $0x229] sm:$0xff] }
  0x47   :  { %v113_v60 = vld [vmem:[%s4257_s0 + $0xf8] sm:$0xff]  ;;  %v289_v62 = vld [vmem:[#allocation2 + $0xa9] sm:$0xff]  ;;  %v323_v19 = vld [vmem:[#allocation2 + $0x241] sm:$0xff] }
  0x48   :  { %178 = vst.msk [vmem:[#allocation2 + $0x171] sm:$0xff] %vm146_vm0, %v113_v60  ;;  %v385_v3 = vld [vmem:[#allocation2 + $0x22a] sm:$0xff]  ;;  %v291_v20 = vld [vmem:[#allocation2 + $0xc1] sm:$0xff]  ;;  %v245_v35 = vld [vmem:[#allocation2 + $0x198] sm:$0xff] }
  0x49   :  { %539 = vrot.lane.b32.xlu1 %v311_v58, %s2854_s11  ;;  %475 = vrot.lane.b32.xlu0 %v279_v59, %s2854_s11  ;;  %v352_v58 = vld [vmem:[#allocation2 + $0x9a] sm:$0xff]  ;;  %v353_v4 = vld [vmem:[#allocation2 + $0xaa] sm:$0xff]  ;;  %v387_v31 = vld [vmem:[#allocation2 + $0x242] sm:$0xff] }
  0x4a   :  { %v145_v59 = vld [vmem:[%s4257_s0 + $0x1f8] sm:$0xff]  ;;  %v355_v32 = vld [vmem:[#allocation2 + $0xc2] sm:$0xff] }
  0x4b   :  { %210 = vst.msk [vmem:[#allocation2 + $0x2f1] sm:$0xff] %vm146_vm0, %v145_v59  ;;  %v213_v36 = vld [vmem:[#allocation2 + $0x18] sm:$0xff]  ;;  %v246_v43 = vld [vmem:[#allocation2 + $0x1a0] sm:$0xff] }
  0x4c   :  { %v214_v44 = vld [vmem:[#allocation2 + $0x20] sm:$0xff] }
  0x4d   :  { %541 = vrot.lane.b32.xlu1 %v312_v63, %s2854_s11  ;;  %477 = vrot.lane.b32.xlu0 %v280_v0, %s2854_s11  ;;  %v322_v63 = vld [vmem:[#allocation2 + $0x231] sm:$0xff]  ;;  %v325_v47 = vld [vmem:[#allocation2 + $0x259] sm:$0xff]  ;;  %v326_v55 = vld [vmem:[#allocation2 + $0x261] sm:$0xff] }
  0x4e   :  { %v290_v0 = vld [vmem:[#allocation2 + $0xb1] sm:$0xff]  ;;  %v293_v48 = vld [vmem:[#allocation2 + $0xd9] sm:$0xff]  ;;  %v294_v56 = vld [vmem:[#allocation2 + $0xe1] sm:$0xff] }
  0x4f   :  { %v389_v59 = vld [vmem:[#allocation2 + $0x25a] sm:$0xff] }
  0x50   :  { %v357_v60 = vld [vmem:[#allocation2 + $0xda] sm:$0xff] }
  0x51   :  { %795 = vrot.lane.b32.xlu1 %v375_v5, %s2855_s12  ;;  %731 = vrot.lane.b32.xlu0 %v343_v6, %s2855_s12 }
  0x55   :  { %797 = vrot.lane.b32.xlu1 %v376_v7, %s2855_s12  ;;  %733 = vrot.lane.b32.xlu0 %v344_v8, %s2855_s12  ;;  %v211_v7 = vld [vmem:[#allocation2] sm:$0xff] }
  0x56   :  { %v243_v8 = vld [vmem:[#allocation2 + $0x180] sm:$0xff] }
  0x59   :  { %543 = vrot.lane.b32.xlu1 %v313_v9, %s2854_s11  ;;  %479 = vrot.lane.b32.xlu0 %v281_v10, %s2854_s11  ;;  %v386_v9 = vld [vmem:[#allocation2 + $0x232] sm:$0xff] }
  0x5a   :  { %v354_v10 = vld [vmem:[#allocation2 + $0xb2] sm:$0xff] }
  0x5d   :  { %545 = vrot.lane.b32.xlu1 %v314_v15, %s2854_s11  ;;  %481 = vrot.lane.b32.xlu0 %v282_v16, %s2854_s11  ;;  %v212_v15 = vld [vmem:[#allocation2 + $0x8] sm:$0xff] }
  0x5e   :  { %v244_v16 = vld [vmem:[#allocation2 + $0x188] sm:$0xff] }
  0x61   :  { %799 = vrot.lane.b32.xlu1 %v377_v17, %s2855_s12  ;;  %735 = vrot.lane.b32.xlu0 %v345_v18, %s2855_s12 }
  0x65   :  { %801 = vrot.lane.b32.xlu1 %v378_v21, %s2855_s12  ;;  %737 = vrot.lane.b32.xlu0 %v346_v22, %s2855_s12 }
  0x69   :  { %547 = vrot.lane.b32.xlu1 %v315_v25, %s2854_s11  ;;  %483 = vrot.lane.b32.xlu0 %v283_v26, %s2854_s11 }
  0x6d   :  { %549 = vrot.lane.b32.xlu1 %v316_v27, %s2854_s11  ;;  %485 = vrot.lane.b32.xlu0 %v284_v28, %s2854_s11  ;;  %v324_v27 = vld [vmem:[#allocation2 + $0x249] sm:$0xff] }
  0x6e   :  { %v292_v28 = vld [vmem:[#allocation2 + $0xc9] sm:$0xff] }
  0x71   :  { %803 = vrot.lane.b32.xlu1 %v379_v29, %s2855_s12  ;;  %739 = vrot.lane.b32.xlu0 %v347_v30, %s2855_s12 }
  0x75   :  { %805 = vrot.lane.b32.xlu1 %v380_v33, %s2855_s12  ;;  %741 = vrot.lane.b32.xlu0 %v348_v34, %s2855_s12 }
  0x79   :  { %551 = vrot.lane.b32.xlu1 %v317_v37, %s2854_s11  ;;  %487 = vrot.lane.b32.xlu0 %v285_v38, %s2854_s11  ;;  %v388_v37 = vld [vmem:[#allocation2 + $0x24a] sm:$0xff] }
  0x7a   :  { %v356_v38 = vld [vmem:[#allocation2 + $0xca] sm:$0xff] }
  0x7d   :  { %553 = vrot.lane.b32.xlu1 %v318_v39, %s2854_s11  ;;  %489 = vrot.lane.b32.xlu0 %v286_v40, %s2854_s11 }
  0x81   :  { %807 = vrot.lane.b32.xlu1 %v381_v41, %s2855_s12  ;;  %743 = vrot.lane.b32.xlu0 %v349_v42, %s2855_s12 }
  0x85   :  { %809 = vrot.lane.b32.xlu1 %v382_v45, %s2855_s12  ;;  %745 = vrot.lane.b32.xlu0 %v350_v46, %s2855_s12 }
  0x89   :  { %555 = vrot.lane.b32.xlu1 %v319_v49, %s2854_s11  ;;  %491 = vrot.lane.b32.xlu0 %v287_v50, %s2854_s11 }
  0x8d   :  { %557 = vrot.lane.b32.xlu1 %v320_v51, %s2854_s11  ;;  %493 = vrot.lane.b32.xlu0 %v288_v52, %s2854_s11 }
  0x91   :  { %811 = vrot.lane.b32.xlu1 %v383_v53, %s2855_s12  ;;  %747 = vrot.lane.b32.xlu0 %v351_v54, %s2855_s12 }
  0x95   :  { %813 = vrot.lane.b32.xlu1 %v384_v57, %s2855_s12  ;;  %749 = vrot.lane.b32.xlu0 %v352_v58, %s2855_s12 }
  0x99   :  { %559 = vrot.lane.b32.xlu1 %v321_v61, %s2854_s11  ;;  %495 = vrot.lane.b32.xlu0 %v289_v62, %s2854_s11 }
  0x9b   :  { %v470_v1 = vpop.permute.xlu1 %469  ;;  %v468_v2 = vpop.permute.xlu0 %467 }
  0x9c   :  { %v915_v11 = vsel %vm146_vm0, %v211_v7, %v468_v2  ;;  %v916_v21 = vsel %vm146_vm0, %v212_v15, %v470_v1  ;;  %v390_v1 = vld [vmem:[#allocation2 + $0x262] sm:$0xff]  ;;  %v248_v7 = vld [vmem:[#allocation2 + $0x1b8] sm:$0xff] }
  0x9d   :  { %561 = vrot.lane.b32.xlu1 %v322_v63, %s2854_s11  ;;  %497 = vrot.lane.b32.xlu0 %v290_v0, %s2854_s11  ;;  %v247_v63 = vld [vmem:[#allocation2 + $0x1b0] sm:$0xff]  ;;  %v358_v2 = vld [vmem:[#allocation2 + $0xe2] sm:$0xff] }
  0x9e   :  { %v215_v0 = vld [vmem:[#allocation2 + $0x30] sm:$0xff] }
  0x9f   :  { %v534_v5 = vpop.permute.xlu1 %533  ;;  %v532_v6 = vpop.permute.xlu0 %531 }
  0xa0   :  { %v947_v12 = vsel %vm146_vm0, %v243_v8, %v532_v6  ;;  %v948_v22 = vsel %vm146_vm0, %v244_v16, %v534_v5  ;;  %v216_v8 = vld [vmem:[#allocation2 + $0x38] sm:$0xff] }
  0xa1   :  { %815 = vrot.lane.b32.xlu1 %v385_v3, %s2855_s12  ;;  %751 = vrot.lane.b32.xlu0 %v353_v4, %s2855_s12 }
  0xa3   :  { %v788_v13 = vpop.permute.xlu1 %787  ;;  %v724_v14 = vpop.permute.xlu0 %723 }
  0xa4   :  { %v980_v17 = vsel %vm979_vm5, %v915_v11, %v724_v14  ;;  %v1012_v18 = vsel %vm979_vm5, %v947_v12, %v788_v13  ;;  %v327_v11 = vld [vmem:[#allocation2 + $0x271] sm:$0xff] }
  0xa5   :  { %817 = vrot.lane.b32.xlu1 %v386_v9, %s2855_s12  ;;  %753 = vrot.lane.b32.xlu0 %v354_v10, %s2855_s12  ;;  %v295_v12 = vld [vmem:[#allocation2 + $0xf1] sm:$0xff] }
  0xa6   :  { %2487 = vmatprep.mubr.msk.f32.mxu0 %vm1046_vm6, %v980_v17  ;;  %2535 = vmatprep.mubr.msk.f32.mxu1 %vm1046_vm6, %v1012_v18 }
  0xa7   :  { %v790_v23 = vpop.permute.xlu1 %789  ;;  %v726_v24 = vpop.permute.xlu0 %725 }
  0xa8   :  { %v1013_v25 = vsel %vm979_vm5, %v948_v22, %v790_v23  ;;  %v981_v26 = vsel %vm979_vm5, %v916_v21, %v726_v24  ;;  %v391_v23 = vld [vmem:[#allocation2 + $0x272] sm:$0xff] }
  0xa9   :  { %563 = vrot.lane.b32.xlu1 %v323_v19, %s2854_s11  ;;  %499 = vrot.lane.b32.xlu0 %v291_v20, %s2854_s11  ;;  %v328_v19 = vld [vmem:[#allocation2 + $0x279] sm:$0xff] }
  0xaa   :  { %2488 = vmatmul.mubr.msk.f32.vlgmr.msra.gmra.mrb[0].mxu0 %vm1046_vm6, %v981_v26  ;;  %2536 = vmatmul.mubr.msk.f32.vlgmr.msra.gmra.mrb[0].mxu1 %vm1046_vm6, %v1013_v25  ;;  %v296_v20 = vld [vmem:[#allocation2 + $0xf9] sm:$0xff] }
  0xab   :  { %v536_v29 = vpop.permute.xlu1 %535  ;;  %v472_v30 = vpop.permute.xlu0 %471  ;;  %v359_v24 = vld [vmem:[#allocation2 + $0xf2] sm:$0xff] }
  0xac   :  { %v949_v39 = vsel %vm146_vm0, %v245_v35, %v536_v29  ;;  %v917_v40 = vsel %vm146_vm0, %v213_v36, %v472_v30  ;;  %v392_v29 = vld [vmem:[#allocation2 + $0x27a] sm:$0xff]  ;;  %v250_v35 = vld [vmem:[#allocation2 + $0x1d0] sm:$0xff] }
  0xad   :  { %565 = vrot.lane.b32.xlu1 %v324_v27, %s2854_s11  ;;  %501 = vrot.lane.b32.xlu0 %v292_v28, %s2854_s11  ;;  %v249_v27 = vld [vmem:[#allocation2 + $0x1c8] sm:$0xff]  ;;  %v360_v30 = vld [vmem:[#allocation2 + $0xfa] sm:$0xff]  ;;  %v218_v36 = vld [vmem:[#allocation2 + $0x50] sm:$0xff] }
  0xae   :  { %v217_v28 = vld [vmem:[#allocation2 + $0x48] sm:$0xff] }
  0xaf   :  { %v538_v33 = vpop.permute.xlu1 %537  ;;  %v474_v34 = vpop.permute.xlu0 %473 }
  0xb0   :  { %v950_v49 = vsel %vm146_vm0, %v246_v43, %v538_v33  ;;  %v918_v50 = vsel %vm146_vm0, %v214_v44, %v474_v34 }
  0xb1   :  { %819 = vrot.lane.b32.xlu1 %v387_v31, %s2855_s12  ;;  %755 = vrot.lane.b32.xlu0 %v355_v32, %s2855_s12 }
  0xb3   :  { %v792_v41 = vpop.permute.xlu1 %791  ;;  %v728_v42 = vpop.permute.xlu0 %727 }
  0xb4   :  { %v1014_v45 = vsel %vm979_vm5, %v949_v39, %v792_v41  ;;  %v982_v46 = vsel %vm979_vm5, %v917_v40, %v728_v42  ;;  %v329_v39 = vld [vmem:[#allocation2 + $0x289] sm:$0xff] }
  0xb5   :  { %821 = vrot.lane.b32.xlu1 %v388_v37, %s2855_s12  ;;  %757 = vrot.lane.b32.xlu0 %v356_v38, %s2855_s12  ;;  %v297_v40 = vld [vmem:[#allocation2 + $0x109] sm:$0xff] }
  0xb6   :  { %2490 = vmatprep.mubr.msk.f32.mxu0 %vm1046_vm6, %v982_v46  ;;  %2538 = vmatprep.mubr.msk.f32.mxu1 %vm1046_vm6, %v1014_v45 }
  0xb7   :  { %v794_v51 = vpop.permute.xlu1 %793  ;;  %v730_v52 = vpop.permute.xlu0 %729 }
  0xb8   :  { %v1015_v53 = vsel %vm979_vm5, %v950_v49, %v794_v51  ;;  %v983_v54 = vsel %vm979_vm5, %v918_v50, %v730_v52  ;;  %v393_v51 = vld [vmem:[#allocation2 + $0x28a] sm:$0xff] }
  0xb9   :  { %567 = vrot.lane.b32.xlu1 %v325_v47, %s2854_s11  ;;  %503 = vrot.lane.b32.xlu0 %v293_v48, %s2854_s11  ;;  %v330_v47 = vld [vmem:[#allocation2 + $0x291] sm:$0xff] }
  0xba   :  { %2491 = vmatmul.mubr.msk.f32.gmra.mrb[2].mxu0 %vm1046_vm6, %v983_v54  ;;  %2539 = vmatmul.mubr.msk.f32.gmra.mrb[2].mxu1 %vm1046_vm6, %v1015_v53  ;;  %v298_v48 = vld [vmem:[#allocation2 + $0x111] sm:$0xff] }
  0xbb   :  { %v540_v57 = vpop.permute.xlu1 %539  ;;  %v476_v58 = vpop.permute.xlu0 %475  ;;  %v361_v52 = vld [vmem:[#allocation2 + $0x10a] sm:$0xff] }
  0xbc   :  { %v951_v3 = vsel %vm146_vm0, %v247_v63, %v540_v57  ;;  %v919_v4 = vsel %vm146_vm0, %v215_v0, %v476_v58  ;;  %v394_v57 = vld [vmem:[#allocation2 + $0x292] sm:$0xff]  ;;  %v252_v63 = vld [vmem:[#allocation2 + $0x1e8] sm:$0xff] }
  0xbd   :  { %569 = vrot.lane.b32.xlu1 %v326_v55, %s2854_s11  ;;  %505 = vrot.lane.b32.xlu0 %v294_v56, %s2854_s11  ;;  %v251_v55 = vld [vmem:[#allocation2 + $0x1e0] sm:$0xff]  ;;  %v362_v58 = vld [vmem:[#allocation2 + $0x112] sm:$0xff]  ;;  %v220_v0 = vld [vmem:[#allocation2 + $0x68] sm:$0xff] }
  0xbe   :  { %v219_v56 = vld [vmem:[#allocation2 + $0x60] sm:$0xff] }
  0xbf   :  { %v542_v61 = vpop.permute.xlu1 %541  ;;  %v478_v62 = vpop.permute.xlu0 %477 }
  0xc0   :  { %v952_v13 = vsel %vm146_vm0, %v248_v7, %v542_v61  ;;  %v920_v14 = vsel %vm146_vm0, %v216_v8, %v478_v62 }
  0xc1   :  { %823 = vrot.lane.b32.xlu1 %v389_v59, %s2855_s12  ;;  %759 = vrot.lane.b32.xlu0 %v357_v60, %s2855_s12 }
  0xc3   :  { %v796_v5 = vpop.permute.xlu1 %795  ;;  %v732_v6 = vpop.permute.xlu0 %731 }
  0xc4   :  { %v1016_v9 = vsel %vm979_vm5, %v951_v3, %v796_v5  ;;  %v984_v10 = vsel %vm979_vm5, %v919_v4, %v732_v6  ;;  %v331_v3 = vld [vmem:[#allocation2 + $0x2a1] sm:$0xff] }
  0xc5   :  { %825 = vrot.lane.b32.xlu1 %v390_v1, %s2855_s12  ;;  %761 = vrot.lane.b32.xlu0 %v358_v2, %s2855_s12  ;;  %v299_v4 = vld [vmem:[#allocation2 + $0x121] sm:$0xff] }
  0xc6   :  { %2493 = vmatprep.mubr.msk.f32.mxu0 %vm1046_vm6, %v984_v10  ;;  %2541 = vmatprep.mubr.msk.f32.mxu1 %vm1046_vm6, %v1016_v9 }
  0xc7   :  { %v798_v15 = vpop.permute.xlu1 %797  ;;  %v734_v16 = vpop.permute.xlu0 %733 }
  0xc8   :  { %v1017_v17 = vsel %vm979_vm5, %v952_v13, %v798_v15  ;;  %v985_v18 = vsel %vm979_vm5, %v920_v14, %v734_v16  ;;  %v395_v15 = vld [vmem:[#allocation2 + $0x2a2] sm:$0xff] }
  0xc9   :  { %571 = vrot.lane.b32.xlu1 %v327_v11, %s2854_s11  ;;  %507 = vrot.lane.b32.xlu0 %v295_v12, %s2854_s11  ;;  %v332_v11 = vld [vmem:[#allocation2 + $0x2a9] sm:$0xff] }
  0xca   :  { %2494 = vmatmul.mubr.msk.f32.gmra.mrb[4].mxu0 %vm1046_vm6, %v985_v18  ;;  %2542 = vmatmul.mubr.msk.f32.gmra.mrb[4].mxu1 %vm1046_vm6, %v1017_v17  ;;  %v300_v12 = vld [vmem:[#allocation2 + $0x129] sm:$0xff] }
  0xcb   :  { %v544_v21 = vpop.permute.xlu1 %543  ;;  %v480_v22 = vpop.permute.xlu0 %479  ;;  %v363_v16 = vld [vmem:[#allocation2 + $0x122] sm:$0xff] }
  0xcc   :  { %v953_v31 = vsel %vm146_vm0, %v249_v27, %v544_v21  ;;  %v921_v32 = vsel %vm146_vm0, %v217_v28, %v480_v22  ;;  %v396_v21 = vld [vmem:[#allocation2 + $0x2aa] sm:$0xff]  ;;  %v254_v27 = vld [vmem:[#allocation2 + $0x200] sm:$0xff] }
  0xcd   :  { %573 = vrot.lane.b32.xlu1 %v328_v19, %s2854_s11  ;;  %509 = vrot.lane.b32.xlu0 %v296_v20, %s2854_s11  ;;  %v253_v19 = vld [vmem:[#allocation2 + $0x1f8] sm:$0xff]  ;;  %v222_v28 = vld [vmem:[#allocation2 + $0x80] sm:$0xff] }
  0xce   :  { %v221_v20 = vld [vmem:[#allocation2 + $0x78] sm:$0xff] }
  0xcf   :  { %v546_v25 = vpop.permute.xlu1 %545  ;;  %v482_v26 = vpop.permute.xlu0 %481 }
  0xd0   :  { %v954_v41 = vsel %vm146_vm0, %v250_v35, %v546_v25  ;;  %v922_v42 = vsel %vm146_vm0, %v218_v36, %v482_v26  ;;  %v364_v26 = vld [vmem:[#allocation2 + $0x12a] sm:$0xff]  ;;  %v301_v36 = vld [vmem:[#allocation2 + $0x139] sm:$0xff] }
  0xd1   :  { %827 = vrot.lane.b32.xlu1 %v391_v23, %s2855_s12  ;;  %763 = vrot.lane.b32.xlu0 %v359_v24, %s2855_s12 }
  0xd3   :  { %v800_v33 = vpop.permute.xlu1 %799  ;;  %v736_v34 = vpop.permute.xlu0 %735 }
  0xd4   :  { %v1018_v37 = vsel %vm979_vm5, %v953_v31, %v800_v33  ;;  %v986_v38 = vsel %vm979_vm5, %v921_v32, %v736_v34  ;;  %v333_v31 = vld [vmem:[#allocation2 + $0x2b9] sm:$0xff] }
  0xd5   :  { %829 = vrot.lane.b32.xlu1 %v392_v29, %s2855_s12  ;;  %765 = vrot.lane.b32.xlu0 %v360_v30, %s2855_s12 }
  0xd6   :  { %2496 = vmatprep.mubr.msk.f32.mxu0 %vm1046_vm6, %v986_v38  ;;  %2544 = vmatprep.mubr.msk.f32.mxu1 %vm1046_vm6, %v1018_v37 }
  0xd7   :  { %v802_v43 = vpop.permute.xlu1 %801  ;;  %v738_v44 = vpop.permute.xlu0 %737 }
  0xd8   :  { %v1019_v45 = vsel %vm979_vm5, %v954_v41, %v802_v43  ;;  %v987_v46 = vsel %vm979_vm5, %v922_v42, %v738_v44  ;;  %v302_v42 = vld [vmem:[#allocation2 + $0x141] sm:$0xff] }
  0xd9   :  { %575 = vrot.lane.b32.xlu1 %v329_v39, %s2854_s11  ;;  %511 = vrot.lane.b32.xlu0 %v297_v40, %s2854_s11  ;;  %v334_v39 = vld [vmem:[#allocation2 + $0x2c1] sm:$0xff] }
  0xda   :  { %2497 = vmatmul.mubr.msk.f32.gmra.mrb[6].mxu0 %vm1046_vm6, %v987_v46  ;;  %2545 = vmatmul.mubr.msk.f32.gmra.mrb[6].mxu1 %vm1046_vm6, %v1019_v45  ;;  %v397_v43 = vld [vmem:[#allocation2 + $0x2ba] sm:$0xff] }
  0xdb   :  { %v548_v49 = vpop.permute.xlu1 %547  ;;  %v484_v50 = vpop.permute.xlu0 %483  ;;  %v365_v46 = vld [vmem:[#allocation2 + $0x13a] sm:$0xff] }
  0xdc   :  { %v955_v59 = vsel %vm146_vm0, %v251_v55, %v548_v49  ;;  %v923_v60 = vsel %vm146_vm0, %v219_v56, %v484_v50  ;;  %v398_v49 = vld [vmem:[#allocation2 + $0x2c2] sm:$0xff]  ;;  %v256_v55 = vld [vmem:[#allocation2 + $0x218] sm:$0xff] }
  0xdd   :  { %577 = vrot.lane.b32.xlu1 %v330_v47, %s2854_s11  ;;  %513 = vrot.lane.b32.xlu0 %v298_v48, %s2854_s11  ;;  %v255_v47 = vld [vmem:[#allocation2 + $0x210] sm:$0xff]  ;;  %v224_v56 = vld [vmem:[#allocation2 + $0x98] sm:$0xff] }
  0xde   :  { %v223_v48 = vld [vmem:[#allocation2 + $0x90] sm:$0xff] }
  0xdf   :  { %v550_v53 = vpop.permute.xlu1 %549  ;;  %v486_v54 = vpop.permute.xlu0 %485 }
  0xe0   :  { %v956_v5 = vsel %vm146_vm0, %v252_v63, %v550_v53  ;;  %v924_v6 = vsel %vm146_vm0, %v220_v0, %v486_v54  ;;  %v366_v54 = vld [vmem:[#allocation2 + $0x142] sm:$0xff]  ;;  %v303_v0 = vld [vmem:[#allocation2 + $0x151] sm:$0xff] }
  0xe1   :  { %831 = vrot.lane.b32.xlu1 %v393_v51, %s2855_s12  ;;  %767 = vrot.lane.b32.xlu0 %v361_v52, %s2855_s12 }
  0xe3   :  { %v804_v61 = vpop.permute.xlu1 %803  ;;  %v740_v62 = vpop.permute.xlu0 %739 }
  0xe4   :  { %v1020_v1 = vsel %vm979_vm5, %v955_v59, %v804_v61  ;;  %v988_v2 = vsel %vm979_vm5, %v923_v60, %v740_v62  ;;  %v335_v59 = vld [vmem:[#allocation2 + $0x2d1] sm:$0xff] }
  0xe5   :  { %833 = vrot.lane.b32.xlu1 %v394_v57, %s2855_s12  ;;  %769 = vrot.lane.b32.xlu0 %v362_v58, %s2855_s12 }
  0xe6   :  { %2499 = vmatprep.mubr.msk.f32.mxu0 %vm1046_vm6, %v988_v2  ;;  %2547 = vmatprep.mubr.msk.f32.mxu1 %vm1046_vm6, %v1020_v1 }
  0xe7   :  { %v806_v7 = vpop.permute.xlu1 %805  ;;  %v742_v8 = vpop.permute.xlu0 %741 }
  0xe8   :  { %v1021_v9 = vsel %vm979_vm5, %v956_v5, %v806_v7  ;;  %v989_v10 = vsel %vm979_vm5, %v924_v6, %v742_v8  ;;  %v304_v6 = vld [vmem:[#allocation2 + $0x159] sm:$0xff] }
  0xe9   :  { %579 = vrot.lane.b32.xlu1 %v331_v3, %s2854_s11  ;;  %515 = vrot.lane.b32.xlu0 %v299_v4, %s2854_s11  ;;  %v336_v3 = vld [vmem:[#allocation2 + $0x2d9] sm:$0xff] }
  0xea   :  { %2500 = vmatmul.mubr.msk.f32.gmra.mrb[8].mxu0 %vm1046_vm6, %v989_v10  ;;  %2548 = vmatmul.mubr.msk.f32.gmra.mrb[8].mxu1 %vm1046_vm6, %v1021_v9  ;;  %v399_v7 = vld [vmem:[#allocation2 + $0x2d2] sm:$0xff] }
  0xeb   :  { %v552_v13 = vpop.permute.xlu1 %551  ;;  %v488_v14 = vpop.permute.xlu0 %487  ;;  %v367_v10 = vld [vmem:[#allocation2 + $0x152] sm:$0xff] }
  0xec   :  { %v957_v22 = vsel %vm146_vm0, %v253_v19, %v552_v13  ;;  %v925_v23 = vsel %vm146_vm0, %v221_v20, %v488_v14  ;;  %v400_v13 = vld [vmem:[#allocation2 + $0x2da] sm:$0xff]  ;;  %v258_v19 = vld [vmem:[#allocation2 + $0x230] sm:$0xff] }
  0xed   :  { %581 = vrot.lane.b32.xlu1 %v332_v11, %s2854_s11  ;;  %517 = vrot.lane.b32.xlu0 %v300_v12, %s2854_s11  ;;  %v257_v11 = vld [vmem:[#allocation2 + $0x228] sm:$0xff]  ;;  %v226_v20 = vld [vmem:[#allocation2 + $0xb0] sm:$0xff] }
  0xee   :  { %v225_v12 = vld [vmem:[#allocation2 + $0xa8] sm:$0xff] }
  0xef   :  { %v554_v17 = vpop.permute.xlu1 %553  ;;  %v490_v18 = vpop.permute.xlu0 %489 }
  0xf0   :  { %v958_v32 = vsel %vm146_vm0, %v254_v27, %v554_v17  ;;  %v926_v33 = vsel %vm146_vm0, %v222_v28, %v490_v18  ;;  %v368_v18 = vld [vmem:[#allocation2 + $0x15a] sm:$0xff]  ;;  %v305_v28 = vld [vmem:[#allocation2 + $0x169] sm:$0xff] }
  0xf1   :  { %835 = vrot.lane.b32.xlu1 %v395_v15, %s2855_s12  ;;  %771 = vrot.lane.b32.xlu0 %v363_v16, %s2855_s12 }
  0xf3   :  { %v808_v24 = vpop.permute.xlu1 %807  ;;  %v744_v25 = vpop.permute.xlu0 %743 }
  0xf4   :  { %v1022_v29 = vsel %vm979_vm5, %v957_v22, %v808_v24  ;;  %v990_v30 = vsel %vm979_vm5, %v925_v23, %v744_v25  ;;  %v337_v23 = vld [vmem:[#allocation2 + $0x2e9] sm:$0xff] }
  0xf5   :  { %837 = vrot.lane.b32.xlu1 %v396_v21, %s2855_s12  ;;  %2550 = vmatprep.mubr.msk.f32.mxu1 %vm1046_vm6, %v1022_v29 }
  0xf6   :  { %773 = vrot.lane.b32.xlu0 %v364_v26, %s2855_s12  ;;  %2502 = vmatprep.mubr.msk.f32.mxu0 %vm1046_vm6, %v990_v30 }
  0xf7   :  { %v810_v34 = vpop.permute.xlu1 %809  ;;  %v746_v35 = vpop.permute.xlu0 %745 }
  0xf8   :  { %v1023_v37 = vsel %vm979_vm5, %v958_v32, %v810_v34  ;;  %v991_v38 = vsel %vm979_vm5, %v926_v33, %v746_v35  ;;  %v306_v34 = vld [vmem:[#allocation2 + $0x171] sm:$0xff] }
  0xf9   :  { %583 = vrot.lane.b32.xlu1 %v333_v31, %s2854_s11  ;;  %2551 = vmatmul.mubr.msk.f32.gmra.mrb[10].mxu1 %vm1046_vm6, %v1023_v37  ;;  %v338_v31 = vld [vmem:[#allocation2 + $0x2f1] sm:$0xff] }
  0xfa   :  { %519 = vrot.lane.b32.xlu0 %v301_v36, %s2854_s11  ;;  %2503 = vmatmul.mubr.msk.f32.gmra.mrb[10].mxu0 %vm1046_vm6, %v991_v38  ;;  %v401_v35 = vld [vmem:[#allocation2 + $0x2ea] sm:$0xff] }
  0xfb   :  { %v556_v40 = vpop.permute.xlu1 %555  ;;  %v492_v41 = vpop.permute.xlu0 %491  ;;  %v369_v38 = vld [vmem:[#allocation2 + $0x16a] sm:$0xff] }
  0xfc   :  { %v959_v50 = vsel %vm146_vm0, %v255_v47, %v556_v40  ;;  %v927_v51 = vsel %vm146_vm0, %v223_v48, %v492_v41  ;;  %v227_v40 = vld [vmem:[#allocation2 + $0xc0] sm:$0xff]  ;;  %v402_v41 = vld [vmem:[#allocation2 + $0x2f2] sm:$0xff]  ;;  %v260_v47 = vld [vmem:[#allocation2 + $0x248] sm:$0xff] }
  0xfd   :  { %585 = vrot.lane.b32.xlu1 %v334_v39, %s2854_s11  ;;  %v259_v39 = vld [vmem:[#allocation2 + $0x240] sm:$0xff]  ;;  %v228_v48 = vld [vmem:[#allocation2 + $0xc8] sm:$0xff] }
  0xfe   :  { %521 = vrot.lane.b32.xlu0 %v302_v42, %s2854_s11 }
  0xff   :  { %v558_v44 = vpop.permute.xlu1 %557  ;;  %v494_v45 = vpop.permute.xlu0 %493 }
 0x100   :  { %v960_v60 = vsel %vm146_vm0, %v256_v55, %v558_v44  ;;  %v928_v61 = vsel %vm146_vm0, %v224_v56, %v494_v45 }
 0x101   :  { %839 = vrot.lane.b32.xlu1 %v397_v43, %s2855_s12 }
 0x102   :  { %775 = vrot.lane.b32.xlu0 %v365_v46, %s2855_s12  ;;  %v370_v46 = vld [vmem:[#allocation2 + $0x172] sm:$0xff] }
 0x103   :  { %v812_v52 = vpop.permute.xlu1 %811  ;;  %v748_v53 = vpop.permute.xlu0 %747 }
 0x104   :  { %v1024_v57 = vsel %vm979_vm5, %v959_v50, %v812_v52  ;;  %v992_v58 = vsel %vm979_vm5, %v927_v51, %v748_v53 }
 0x105   :  { %841 = vrot.lane.b32.xlu1 %v398_v49, %s2855_s12  ;;  %2553 = vmatprep.mubr.msk.f32.mxu1 %vm1046_vm6, %v1024_v57 }
 0x106   :  { %777 = vrot.lane.b32.xlu0 %v366_v54, %s2855_s12  ;;  %2505 = vmatprep.mubr.msk.f32.mxu0 %vm1046_vm6, %v992_v58 }
 0x107   :  { %v814_v62 = vpop.permute.xlu1 %813  ;;  %v750_v63 = vpop.permute.xlu0 %749 }
 0x108   :  { %v1025_v1 = vsel %vm979_vm5, %v960_v60, %v814_v62  ;;  %v993_v2 = vsel %vm979_vm5, %v928_v61, %v750_v63  ;;  %v261_v61 = vld [vmem:[#allocation2 + $0x258] sm:$0xff] }
 0x109   :  { %587 = vrot.lane.b32.xlu1 %v335_v59, %s2854_s11  ;;  %2554 = vmatmul.mubr.msk.f32.gmra.mrb[12].mxu1 %vm1046_vm6, %v1025_v1  ;;  %v229_v62 = vld [vmem:[#allocation2 + $0xd8] sm:$0xff] }
 0x10a   :  { %523 = vrot.lane.b32.xlu0 %v303_v0, %s2854_s11  ;;  %2506 = vmatmul.mubr.msk.f32.gmra.mrb[12].mxu0 %vm1046_vm6, %v993_v2 }
 0x10b   :  { %v560_v4 = vpop.permute.xlu1 %559  ;;  %v496_v5 = vpop.permute.xlu0 %495 }
 0x10c   :  { %v961_v14 = vsel %vm146_vm0, %v257_v11, %v560_v4  ;;  %v929_v15 = vsel %vm146_vm0, %v225_v12, %v496_v5  ;;  %v230_v4 = vld [vmem:[#allocation2 + $0xe0] sm:$0xff] }
 0x10d   :  { %589 = vrot.lane.b32.xlu1 %v336_v3, %s2854_s11  ;;  %v262_v3 = vld [vmem:[#allocation2 + $0x260] sm:$0xff] }
 0x10e   :  { %525 = vrot.lane.b32.xlu0 %v304_v6, %s2854_s11 }
 0x10f   :  { %v562_v8 = vpop.permute.xlu1 %561  ;;  %v498_v9 = vpop.permute.xlu0 %497 }
 0x110   :  { %v962_v24 = vsel %vm146_vm0, %v258_v19, %v562_v8  ;;  %v930_v25 = vsel %vm146_vm0, %v226_v20, %v498_v9 }
 0x111   :  { %843 = vrot.lane.b32.xlu1 %v399_v7, %s2855_s12 }
 0x112   :  { %779 = vrot.lane.b32.xlu0 %v367_v10, %s2855_s12 }
 0x113   :  { %v816_v16 = vpop.permute.xlu1 %815  ;;  %v752_v17 = vpop.permute.xlu0 %751 }
 0x114   :  { %v1026_v21 = vsel %vm979_vm5, %v961_v14, %v816_v16  ;;  %v994_v22 = vsel %vm979_vm5, %v929_v15, %v752_v17  ;;  %v263_v17 = vld [vmem:[#allocation2 + $0x270] sm:$0xff] }
 0x115   :  { %845 = vrot.lane.b32.xlu1 %v400_v13, %s2855_s12  ;;  %2556 = vmatprep.mubr.msk.f32.mxu1 %vm1046_vm6, %v1026_v21 }
 0x116   :  { %781 = vrot.lane.b32.xlu0 %v368_v18, %s2855_s12  ;;  %2508 = vmatprep.mubr.msk.f32.mxu0 %vm1046_vm6, %v994_v22  ;;  %v231_v18 = vld [vmem:[#allocation2 + $0xf0] sm:$0xff] }
 0x117   :  { %v818_v26 = vpop.permute.xlu1 %817  ;;  %v754_v27 = vpop.permute.xlu0 %753 }
 0x118   :  { %v1027_v29 = vsel %vm979_vm5, %v962_v24, %v818_v26  ;;  %v995_v30 = vsel %vm979_vm5, %v930_v25, %v754_v27  ;;  %v232_v24 = vld [vmem:[#allocation2 + $0xf8] sm:$0xff] }
 0x119   :  { %591 = vrot.lane.b32.xlu1 %v337_v23, %s2854_s11  ;;  %2557 = vmatmul.mubr.msk.f32.gmra.mrb[14].mxu1 %vm1046_vm6, %v1027_v29  ;;  %v264_v23 = vld [vmem:[#allocation2 + $0x278] sm:$0xff] }
 0x11a   :  { %527 = vrot.lane.b32.xlu0 %v305_v28, %s2854_s11  ;;  %2509 = vmatmul.mubr.msk.f32.gmra.mrb[14].mxu0 %vm1046_vm6, %v995_v30 }
 0x11b   :  { %v564_v32 = vpop.permute.xlu1 %563  ;;  %v500_v33 = vpop.permute.xlu0 %499 }
 0x11c   :  { %v963_v42 = vsel %vm146_vm0, %v259_v39, %v564_v32  ;;  %v931_v43 = vsel %vm146_vm0, %v227_v40, %v500_v33 }
 0x11d   :  { %593 = vrot.lane.b32.xlu1 %v338_v31, %s2854_s11 }
 0x11e   :  { %529 = vrot.lane.b32.xlu0 %v306_v34, %s2854_s11 }
 0x11f   :  { %v566_v36 = vpop.permute.xlu1 %565  ;;  %v502_v37 = vpop.permute.xlu0 %501 }
 0x120   :  { %v964_v51 = vsel %vm146_vm0, %v260_v47, %v566_v36  ;;  %v932_v52 = vsel %vm146_vm0, %v228_v48, %v502_v37  ;;  %v265_v37 = vld [vmem:[#allocation2 + $0x288] sm:$0xff] }
 0x121   :  { %847 = vrot.lane.b32.xlu1 %v401_v35, %s2855_s12 }
 0x122   :  { %783 = vrot.lane.b32.xlu0 %v369_v38, %s2855_s12  ;;  %v233_v38 = vld [vmem:[#allocation2 + $0x108] sm:$0xff] }
 0x123   :  { %v820_v44 = vpop.permute.xlu1 %819  ;;  %v756_v45 = vpop.permute.xlu0 %755 }
 0x124   :  { %v1028_v49 = vsel %vm979_vm5, %v963_v42, %v820_v44  ;;  %v996_v50 = vsel %vm979_vm5, %v931_v43, %v756_v45  ;;  %v266_v43 = vld [vmem:[#allocation2 + $0x290] sm:$0xff] }
 0x125   :  { %849 = vrot.lane.b32.xlu1 %v402_v41, %s2855_s12  ;;  %2559 = vmatprep.mubr.msk.f32.mxu1 %vm1046_vm6, %v1028_v49  ;;  %v234_v44 = vld [vmem:[#allocation2 + $0x110] sm:$0xff] }
 0x126   :  { %785 = vrot.lane.b32.xlu0 %v370_v46, %s2855_s12  ;;  %2511 = vmatprep.mubr.msk.f32.mxu0 %vm1046_vm6, %v996_v50 }
 0x127   :  { %v822_v53 = vpop.permute.xlu1 %821  ;;  %v758_v54 = vpop.permute.xlu0 %757 }
 0x128   :  { %v1029_v55 = vsel %vm979_vm5, %v964_v51, %v822_v53  ;;  %v997_v56 = vsel %vm979_vm5, %v932_v52, %v758_v54 }
 0x129   :  { %2512 = vmatmul.mubr.msk.f32.gmra.mrb[16].mxu0 %vm1046_vm6, %v997_v56  ;;  %2560 = vmatmul.mubr.msk.f32.gmra.mrb[16].mxu1 %vm1046_vm6, %v1029_v55 }
 0x12b   :  { %v568_v57 = vpop.permute.xlu1 %567  ;;  %v504_v58 = vpop.permute.xlu0 %503 }
 0x12c   :  { %v965_v63 = vsel %vm146_vm0, %v261_v61, %v568_v57  ;;  %v933_v0 = vsel %vm146_vm0, %v229_v62, %v504_v58  ;;  %v267_v57 = vld [vmem:[#allocation2 + $0x2a0] sm:$0xff] }
 0x12d   :  { %v235_v58 = vld [vmem:[#allocation2 + $0x120] sm:$0xff] }
 0x12f   :  { %v570_v59 = vpop.permute.xlu1 %569  ;;  %v506_v60 = vpop.permute.xlu0 %505 }
 0x130   :  { %v966_v7 = vsel %vm146_vm0, %v262_v3, %v570_v59  ;;  %v934_v8 = vsel %vm146_vm0, %v230_v4, %v506_v60 }
 0x133   :  { %v824_v1 = vpop.permute.xlu1 %823  ;;  %v760_v2 = vpop.permute.xlu0 %759 }
 0x134   :  { %v1030_v5 = vsel %vm979_vm5, %v965_v63, %v824_v1  ;;  %v998_v6 = vsel %vm979_vm5, %v933_v0, %v760_v2  ;;  %v268_v63 = vld [vmem:[#allocation2 + $0x2a8] sm:$0xff] }
 0x135   :  { %2514 = vmatprep.mubr.msk.f32.mxu0 %vm1046_vm6, %v998_v6  ;;  %2562 = vmatprep.mubr.msk.f32.mxu1 %vm1046_vm6, %v1030_v5  ;;  %v236_v2 = vld [vmem:[#allocation2 + $0x128] sm:$0xff] }
 0x137   :  { %v826_v9 = vpop.permute.xlu1 %825  ;;  %v762_v10 = vpop.permute.xlu0 %761 }
 0x138   :  { %v1031_v11 = vsel %vm979_vm5, %v966_v7, %v826_v9  ;;  %v999_v12 = vsel %vm979_vm5, %v934_v8, %v762_v10 }
 0x139   :  { %2515 = vmatmul.mubr.msk.f32.gmra.mrb[18].mxu0 %vm1046_vm6, %v999_v12  ;;  %2563 = vmatmul.mubr.msk.f32.gmra.mrb[18].mxu1 %vm1046_vm6, %v1031_v11  ;;  %v269_v12 = vld [vmem:[#allocation2 + $0x2b8] sm:$0xff] }
 0x13b   :  { %v572_v13 = vpop.permute.xlu1 %571  ;;  %v508_v14 = vpop.permute.xlu0 %507 }
 0x13c   :  { %v967_v19 = vsel %vm146_vm0, %v263_v17, %v572_v13  ;;  %v935_v20 = vsel %vm146_vm0, %v231_v18, %v508_v14  ;;  %v237_v14 = vld [vmem:[#allocation2 + $0x138] sm:$0xff]  ;;  %v270_v18 = vld [vmem:[#allocation2 + $0x2c0] sm:$0xff] }
 0x13f   :  { %v574_v15 = vpop.permute.xlu1 %573  ;;  %v510_v16 = vpop.permute.xlu0 %509 }
 0x140   :  { %v968_v27 = vsel %vm146_vm0, %v264_v23, %v574_v15  ;;  %v936_v28 = vsel %vm146_vm0, %v232_v24, %v510_v16 }
 0x143   :  { %v828_v21 = vpop.permute.xlu1 %827  ;;  %v764_v22 = vpop.permute.xlu0 %763 }
 0x144   :  { %v1032_v25 = vsel %vm979_vm5, %v967_v19, %v828_v21  ;;  %v1000_v26 = vsel %vm979_vm5, %v935_v20, %v764_v22  ;;  %v238_v21 = vld [vmem:[#allocation2 + $0x140] sm:$0xff] }
 0x145   :  { %2517 = vmatprep.mubr.msk.f32.mxu0 %vm1046_vm6, %v1000_v26  ;;  %2565 = vmatprep.mubr.msk.f32.mxu1 %vm1046_vm6, %v1032_v25 }
 0x147   :  { %v830_v29 = vpop.permute.xlu1 %829  ;;  %v766_v30 = vpop.permute.xlu0 %765 }
 0x148   :  { %v1033_v31 = vsel %vm979_vm5, %v968_v27, %v830_v29  ;;  %v1001_v32 = vsel %vm979_vm5, %v936_v28, %v766_v30  ;;  %v3592_v30 = vld [vmem:[%s4259_s2] ss:$0 sm:$0xff] }
 0x149   :  { %2518 = vmatmul.mubr.msk.f32.gmra.mrb[20].mxu0 %vm1046_vm6, %v1001_v32  ;;  %2566 = vmatmul.mubr.msk.f32.gmra.mrb[20].mxu1 %vm1046_vm6, %v1033_v31 }
 0x14b   :  { %v576_v33 = vpop.permute.xlu1 %575  ;;  %v512_v34 = vpop.permute.xlu0 %511 }
 0x14c   :  { %v969_v39 = vsel %vm146_vm0, %v265_v37, %v576_v33  ;;  %v937_v40 = vsel %vm146_vm0, %v233_v38, %v512_v34  ;;  %v3597_v33 = vld [vmem:[%s4260_s3] ss:$0 sm:$0xff] }
 0x14f   :  { %v578_v35 = vpop.permute.xlu1 %577  ;;  %v514_v36 = vpop.permute.xlu0 %513 }
 0x150   :  { %v970_v47 = vsel %vm146_vm0, %v266_v43, %v578_v35  ;;  %v938_v48 = vsel %vm146_vm0, %v234_v44, %v514_v36 }
 0x153   :  { %v832_v41 = vpop.permute.xlu1 %831  ;;  %v768_v42 = vpop.permute.xlu0 %767 }
 0x154   :  { %v1034_v45 = vsel %vm979_vm5, %v969_v39, %v832_v41  ;;  %v1002_v46 = vsel %vm979_vm5, %v937_v40, %v768_v42  ;;  %v271_v42 = vld [vmem:[#allocation2 + $0x2d0] sm:$0xff] }
 0x155   :  { %2520 = vmatprep.mubr.msk.f32.mxu0 %vm1046_vm6, %v1002_v46  ;;  %2568 = vmatprep.mubr.msk.f32.mxu1 %vm1046_vm6, %v1034_v45  ;;  %v239_v46 = vld [vmem:[#allocation2 + $0x150] sm:$0xff] }
 0x157   :  { %v834_v49 = vpop.permute.xlu1 %833  ;;  %v770_v50 = vpop.permute.xlu0 %769 }
 0x158   :  { %v1035_v51 = vsel %vm979_vm5, %v970_v47, %v834_v49  ;;  %v1003_v52 = vsel %vm979_vm5, %v938_v48, %v770_v50 }
 0x159   :  { %2521 = vmatmul.mubr.msk.f32.gmra.mrb[22].mxu0 %vm1046_vm6, %v1003_v52  ;;  %2569 = vmatmul.mubr.msk.f32.gmra.mrb[22].mxu1 %vm1046_vm6, %v1035_v51 }
 0x15b   :  { %v580_v53 = vpop.permute.xlu1 %579  ;;  %v516_v54 = vpop.permute.xlu0 %515 }
 0x15c   :  { %v971_v59 = vsel %vm146_vm0, %v267_v57, %v580_v53  ;;  %v939_v60 = vsel %vm146_vm0, %v235_v58, %v516_v54 }
 0x15f   :  { %v582_v55 = vpop.permute.xlu1 %581  ;;  %v518_v56 = vpop.permute.xlu0 %517 }
 0x160   :  { %v972_v3 = vsel %vm146_vm0, %v268_v63, %v582_v55  ;;  %v940_v5 = vsel %vm146_vm0, %v236_v2, %v518_v56  ;;  %v272_v56 = vld [vmem:[#allocation2 + $0x2d8] sm:$0xff] }
 0x163   :  { %v836_v61 = vpop.permute.xlu1 %835  ;;  %v772_v62 = vpop.permute.xlu0 %771 }
 0x164   :  { %v1036_v0 = vsel %vm979_vm5, %v971_v59, %v836_v61  ;;  %v1004_v1 = vsel %vm979_vm5, %v939_v60, %v772_v62  ;;  %v240_v59 = vld [vmem:[#allocation2 + $0x158] sm:$0xff] }
 0x165   :  { %2523 = vmatprep.mubr.msk.f32.mxu0 %vm1046_vm6, %v1004_v1  ;;  %2571 = vmatprep.mubr.msk.f32.mxu1 %vm1046_vm6, %v1036_v0 }
 0x167   :  { %v838_v4 = vpop.permute.xlu1 %837 }
 0x168   :  { %v1037_v6 = vsel %vm979_vm5, %v972_v3, %v838_v4  ;;  %v774_v7 = vpop.permute.xlu0 %773 }
 0x169   :  { %v1005_v8 = vsel %vm979_vm5, %v940_v5, %v774_v7  ;;  %2572 = vmatmul.mubr.msk.f32.gmra.mrb[24].mxu1 %vm1046_vm6, %v1037_v6 }
 0x16a   :  { %2524 = vmatmul.mubr.msk.f32.gmra.mrb[24].mxu0 %vm1046_vm6, %v1005_v8 }
 0x16b   :  { %v584_v9 = vpop.permute.xlu1 %583 }
 0x16c   :  { %v520_v10 = vpop.permute.xlu0 %519  ;;  %v973_v15 = vsel %vm146_vm0, %v269_v12, %v584_v9 }
 0x16d   :  { %v941_v17 = vsel %vm146_vm0, %v237_v14, %v520_v10 }
 0x16f   :  { %v586_v11 = vpop.permute.xlu1 %585 }
 0x170   :  { %v522_v13 = vpop.permute.xlu0 %521  ;;  %v974_v23 = vsel %vm146_vm0, %v270_v18, %v586_v11 }
 0x171   :  { %v942_v25 = vsel %vm146_vm0, %v238_v21, %v522_v13 }
 0x173   :  { %v840_v16 = vpop.permute.xlu1 %839 }
 0x174   :  { %v1038_v19 = vsel %vm979_vm5, %v973_v15, %v840_v16  ;;  %v776_v20 = vpop.permute.xlu0 %775 }
 0x175   :  { %v1006_v22 = vsel %vm979_vm5, %v941_v17, %v776_v20  ;;  %2574 = vmatprep.mubr.msk.f32.mxu1 %vm1046_vm6, %v1038_v19  ;;  %v273_v19 = vld [vmem:[#allocation2 + $0x2e8] sm:$0xff] }
 0x176   :  { %2526 = vmatprep.mubr.msk.f32.mxu0 %vm1046_vm6, %v1006_v22 }
 0x177   :  { %v842_v24 = vpop.permute.xlu1 %841 }
 0x178   :  { %v1039_v26 = vsel %vm979_vm5, %v974_v23, %v842_v24  ;;  %v778_v27 = vpop.permute.xlu0 %777 }
 0x179   :  { %v1007_v28 = vsel %vm979_vm5, %v942_v25, %v778_v27  ;;  %2575 = vmatmul.mubr.msk.f32.gmra.mrb[26].mxu1 %vm1046_vm6, %v1039_v26  ;;  %v241_v25 = vld [vmem:[#allocation2 + $0x168] sm:$0xff] }
 0x17a   :  { %2527 = vmatmul.mubr.msk.f32.gmra.mrb[26].mxu0 %vm1046_vm6, %v1007_v28 }
 0x17b   :  { %v588_v29 = vpop.permute.xlu1 %587 }
 0x17c   :  { %v524_v31 = vpop.permute.xlu0 %523  ;;  %v975_v51 = vsel %vm146_vm0, %v271_v42, %v588_v29 }
 0x17d   :  { %v2489_v32 = vpop.f32.mrb[0].mxu0  ;;  %v2537_v34 = vpop.f32.mrb[0].mxu1  ;;  %v943_v55 = vsel %vm146_vm0, %v239_v46, %v524_v31 }
 0x17e   :  { %v1636_v35 = vmul.f32 %v2489_v32, %v3592_v30  ;;  %v1668_v36 = vmul.f32 %v2537_v34, %v3592_v30  ;;  %v1309_v37 = vpop.f32.mrb[1].mxu0  ;;  %v1469_v38 = vpop.f32.mrb[1].mxu1 }
 0x17f   :  { %v1635_v39 = vmul.f32 %v3592_v30, %v1309_v37  ;;  %v1667_v40 = vmul.f32 %v3592_v30, %v1469_v38  ;;  %v590_v41 = vpop.permute.xlu1 %589  ;;  %v274_v38 = vld [vmem:[#allocation2 + $0x2f0] sm:$0xff] }
 0x180   :  { %v3604_v43 = vadd.f32 %v3597_v33, %v1636_v35  ;;  %v3607_v44 = vadd.f32 %v3597_v33, %v1668_v36  ;;  %v526_v45 = vpop.permute.xlu0 %525  ;;  %v976_v61 = vsel %vm146_vm0, %v272_v56, %v590_v41  ;;  %v242_v41 = vld [vmem:[#allocation2 + $0x170] sm:$0xff] }
 0x181   :  { %v3610_v47 = vadd.f32 %v3597_v33, %v1635_v39  ;;  %v3613_v48 = vadd.f32 %v3597_v33, %v1667_v40  ;;  %v944_v63 = vsel %vm146_vm0, %v240_v59, %v526_v45 }
 0x182   :  { %v2354_v49 = vmul.f32 -1.442695, %v3604_v43  ;;  %v2386_v50 = vmul.f32 -1.442695, %v3607_v44 }
 0x183   :  { %v2353_v52 = vmul.f32 -1.442695, %v3610_v47  ;;  %v2385_v53 = vmul.f32 -1.442695, %v3613_v48  ;;  %v844_v54 = vpop.permute.xlu1 %843 }
 0x184   :  { %2595 = vpow2.f32 %v2354_v49  ;;  %v1040_v57 = vsel %vm979_vm5, %v975_v51, %v844_v54  ;;  %v780_v58 = vpop.permute.xlu0 %779 }
 0x185   :  { %2597 = vpow2.f32 %v2386_v50  ;;  %v1008_v60 = vsel %vm979_vm5, %v943_v55, %v780_v58  ;;  %2577 = vmatprep.mubr.msk.f32.mxu1 %vm1046_vm6, %v1040_v57 }
 0x186   :  { %2599 = vpow2.f32 %v2353_v52  ;;  %2529 = vmatprep.mubr.msk.f32.mxu0 %vm1046_vm6, %v1008_v60 }
 0x187   :  { %2601 = vpow2.f32 %v2385_v53  ;;  %v846_v62 = vpop.permute.xlu1 %845 }
 0x188   :  { %v1041_v0 = vsel %vm979_vm5, %v976_v61, %v846_v62  ;;  %v782_v1 = vpop.permute.xlu0 %781 }
 0x189   :  { %v1009_v2 = vsel %vm979_vm5, %v944_v63, %v782_v1  ;;  %2578 = vmatmul.mubr.msk.f32.gmra.mrb[28].mxu1 %vm1046_vm6, %v1041_v0 }
 0x18a   :  { %2530 = vmatmul.mubr.msk.f32.gmra.mrb[28].mxu0 %vm1046_vm6, %v1009_v2 }
 0x18b   :  { %v592_v3 = vpop.permute.xlu1 %591 }
 0x18c   :  { %v528_v4 = vpop.permute.xlu0 %527  ;;  %v977_v32 = vsel %vm146_vm0, %v273_v19, %v592_v3 }
 0x18d   :  { %v2492_v5 = vpop.f32.mrb[2].mxu0  ;;  %v2540_v6 = vpop.f32.mrb[2].mxu1  ;;  %v945_v36 = vsel %vm146_vm0, %v241_v25, %v528_v4 }
 0x18e   :  { %v2596_v7 = vpop.eup %2595  ;;  %v1638_v8 = vmul.f32 %v2492_v5, %v3592_v30  ;;  %v1670_v9 = vmul.f32 %v2540_v6, %v3592_v30  ;;  %v1319_v10 = vpop.f32.mrb[3].mxu0 }
 0x18f   :  { %v1479_v11 = vpop.f32.mrb[3].mxu1  ;;  %v2598_v12 = vpop.eup %2597  ;;  %v1963_v13 = vadd.f32 1.0, %v2596_v7  ;;  %v1637_v14 = vmul.f32 %v3592_v30, %v1319_v10 }
 0x190   :  { %v1669_v15 = vmul.f32 %v3592_v30, %v1479_v11  ;;  %v594_v16 = vpop.permute.xlu1 %593  ;;  %v2600_v17 = vpop.eup %2599  ;;  %v1995_v18 = vadd.f32 1.0, %v2598_v12  ;;  %v3636_v20 = vadd.f32 %v3597_v33, %v1638_v8  ;;  %v3639_v21 = vadd.f32 %v3597_v33, %v1670_v9 }
 0x191   :  { %v530_v22 = vpop.permute.xlu0 %529  ;;  %v2602_v23 = vpop.eup %2601  ;;  %2603 = vrcp.f32 %v1963_v13  ;;  %v1962_v24 = vadd.f32 1.0, %v2600_v17  ;;  %v3642_v26 = vadd.f32 %v3597_v33, %v1637_v14  ;;  %v978_v45 = vsel %vm146_vm0, %v274_v38, %v594_v16 }
 0x192   :  { %v3645_v27 = vadd.f32 %v3597_v33, %v1669_v15  ;;  %2605 = vrcp.f32 %v1995_v18  ;;  %v1994_v28 = vadd.f32 1.0, %v2602_v23  ;;  %v2356_v29 = vmul.f32 -1.442695, %v3636_v20 }
 0x193   :  { %v2388_v31 = vmul.f32 -1.442695, %v3639_v21  ;;  %2607 = vrcp.f32 %v1962_v24  ;;  %v2355_v34 = vmul.f32 -1.442695, %v3642_v26  ;;  %v946_v49 = vsel %vm146_vm0, %v242_v41, %v530_v22 }
 0x194   :  { %v848_v35 = vpop.permute.xlu1 %847  ;;  %2609 = vrcp.f32 %v1994_v28  ;;  %v2387_v37 = vmul.f32 -1.442695, %v3645_v27 }
 0x195   :  { %v1042_v39 = vsel %vm979_vm5, %v977_v32, %v848_v35  ;;  %v784_v40 = vpop.permute.xlu0 %783  ;;  %2611 = vpow2.f32 %v2356_v29 }
 0x196   :  { %v1010_v42 = vsel %vm979_vm5, %v945_v36, %v784_v40  ;;  %2580 = vmatprep.mubr.msk.f32.mxu1 %vm1046_vm6, %v1042_v39  ;;  %2613 = vpow2.f32 %v2388_v31 }
 0x197   :  { %2532 = vmatprep.mubr.msk.f32.mxu0 %vm1046_vm6, %v1010_v42  ;;  %2615 = vpow2.f32 %v2355_v34 }
 0x198   :  { %v850_v46 = vpop.permute.xlu1 %849  ;;  %2617 = vpow2.f32 %v2387_v37 }
 0x199   :  { %v1043_v50 = vsel %vm979_vm5, %v978_v45, %v850_v46  ;;  %v786_v51 = vpop.permute.xlu0 %785 }
 0x19a   :  { %v1011_v52 = vsel %vm979_vm5, %v946_v49, %v786_v51  ;;  %2581 = vmatmul.mubr.msk.f32.gmra.mrb[30].mxu1 %vm1046_vm6, %v1043_v50 }
 0x19b   :  { %2533 = vmatmul.mubr.msk.f32.gmra.mrb[30].mxu0 %vm1046_vm6, %v1011_v52  ;;  %v2604_v53 = vpop.eup %2603 }
 0x19c   :  { %v2606_v54 = vpop.eup %2605  ;;  %v2155_v55 = vmul.f32 %v2604_v53, %v3604_v43 }
 0x19d   :  { %v2608_v56 = vpop.eup %2607  ;;  %v2187_v57 = vmul.f32 %v2606_v54, %v3607_v44  ;;  %v2495_v58 = vpop.f32.mrb[4].mxu0 }
 0x19e   :  { %v2543_v59 = vpop.f32.mrb[4].mxu1  ;;  %v2610_v60 = vpop.eup %2609  ;;  %2219 = vst.msk [vmem:[%s4261_s4 + $0x8] sm:$0xff] %vm146_vm0, %v2155_v55  ;;  %v2154_v61 = vmul.f32 %v2608_v56, %v3610_v47  ;;  %v1640_v62 = vmul.f32 %v2495_v58, %v3592_v30 }
 0x19f   :  { %v1672_v63 = vmul.f32 %v2543_v59, %v3592_v30  ;;  %v1329_v0 = vpop.f32.mrb[5].mxu0  ;;  %v1489_v1 = vpop.f32.mrb[5].mxu1  ;;  %2251 = vst.msk [vmem:[%s4261_s4 + $0x108] sm:$0xff] %vm146_vm0, %v2187_v57  ;;  %v2186_v44 = vmul.f32 %v2610_v60, %v3613_v48 }
 0x1a0   :  { %v2612_v43 = vpop.eup %2611  ;;  %v1639_v2 = vmul.f32 %v3592_v30, %v1329_v0  ;;  %v1671_v3 = vmul.f32 %v3592_v30, %v1489_v1  ;;  %2218 = vst.msk [vmem:[%s4261_s4] sm:$0xff] %vm146_vm0, %v2154_v61  ;;  %v3684_v5 = vadd.f32 %v3597_v33, %v1640_v62 }
 0x1a1   :  { %v2614_v4 = vpop.eup %2613  ;;  %v1965_v47 = vadd.f32 1.0, %v2612_v43  ;;  %v3687_v6 = vadd.f32 %v3597_v33, %v1672_v63  ;;  %2250 = vst.msk [vmem:[%s4261_s4 + $0x100] sm:$0xff] %vm146_vm0, %v2186_v44 }
 0x1a2   :  { %v2616_v7 = vpop.eup %2615  ;;  %v1997_v48 = vadd.f32 1.0, %v2614_v4  ;;  %v3694_v8 = vadd.f32 %v3597_v33, %v1639_v2  ;;  %v3697_v9 = vadd.f32 %v3597_v33, %v1671_v3  ;;  %v2358_v12 = vmul.f32 -1.442695, %v3684_v5 }
 0x1a3   :  { %v2618_v10 = vpop.eup %2617  ;;  %2619 = vrcp.f32 %v1965_v47  ;;  %v1964_v11 = vadd.f32 1.0, %v2616_v7  ;;  %v2390_v14 = vmul.f32 -1.442695, %v3687_v6 }
 0x1a4   :  { %2621 = vrcp.f32 %v1997_v48  ;;  %v1996_v13 = vadd.f32 1.0, %v2618_v10  ;;  %v2357_v15 = vmul.f32 -1.442695, %v3694_v8  ;;  %v2389_v16 = vmul.f32 -1.442695, %v3697_v9 }
 0x1a5   :  { %2623 = vrcp.f32 %v1964_v11 }
 0x1a6   :  { %2625 = vrcp.f32 %v1996_v13 }
 0x1a7   :  { %2627 = vpow2.f32 %v2358_v12 }
 0x1a8   :  { %2629 = vpow2.f32 %v2390_v14 }
 0x1a9   :  { %2631 = vpow2.f32 %v2357_v15 }
 0x1aa   :  { %2633 = vpow2.f32 %v2389_v16 }
 0x1ad   :  { %v2620_v17 = vpop.eup %2619  ;;  %v2498_v22 = vpop.f32.mrb[6].mxu0 }
 0x1ae   :  { %v2622_v18 = vpop.eup %2621  ;;  %v2157_v19 = vmul.f32 %v2620_v17, %v3636_v20  ;;  %v2546_v23 = vpop.f32.mrb[6].mxu1  ;;  %v1642_v28 = vmul.f32 %v2498_v22, %v3592_v30 }
 0x1af   :  { %v2624_v24 = vpop.eup %2623  ;;  %v2189_v25 = vmul.f32 %v2622_v18, %v3639_v21  ;;  %v1674_v29 = vmul.f32 %v2546_v23, %v3592_v30  ;;  %v1339_v31 = vpop.f32.mrb[7].mxu0 }
 0x1b0   :  { %v1499_v32 = vpop.f32.mrb[7].mxu1  ;;  %v2626_v34 = vpop.eup %2625  ;;  %2221 = vst.msk [vmem:[%s4261_s4 + $0x18] sm:$0xff] %vm146_vm0, %v2157_v19  ;;  %v2156_v35 = vmul.f32 %v2624_v24, %v3642_v26  ;;  %v1641_v20 = vmul.f32 %v3592_v30, %v1339_v31  ;;  %v3720_v38 = vadd.f32 %v3597_v33, %v1642_v28 }
 0x1b1   :  { %v1673_v36 = vmul.f32 %v3592_v30, %v1499_v32  ;;  %v2628_v37 = vpop.eup %2627  ;;  %2253 = vst.msk [vmem:[%s4261_s4 + $0x118] sm:$0xff] %vm146_vm0, %v2189_v25  ;;  %v2188_v21 = vmul.f32 %v2626_v34, %v3645_v27  ;;  %v3723_v39 = vadd.f32 %v3597_v33, %v1674_v29 }
 0x1b2   :  { %v2630_v40 = vpop.eup %2629  ;;  %2220 = vst.msk [vmem:[%s4261_s4 + $0x10] sm:$0xff] %vm146_vm0, %v2156_v35  ;;  %v1967_v26 = vadd.f32 1.0, %v2628_v37  ;;  %v3730_v41 = vadd.f32 %v3597_v33, %v1641_v20  ;;  %v2360_v50 = vmul.f32 -1.442695, %v3720_v38 }
 0x1b3   :  { %v2632_v42 = vpop.eup %2631  ;;  %2252 = vst.msk [vmem:[%s4261_s4 + $0x110] sm:$0xff] %vm146_vm0, %v2188_v21  ;;  %v1999_v27 = vadd.f32 1.0, %v2630_v40  ;;  %v3737_v45 = vadd.f32 %v3597_v33, %v1673_v36  ;;  %v2392_v52 = vmul.f32 -1.442695, %v3723_v39 }
 0x1b4   :  { %v2634_v46 = vpop.eup %2633  ;;  %2635 = vrcp.f32 %v1967_v26  ;;  %v1966_v49 = vadd.f32 1.0, %v2632_v42  ;;  %v2359_v53 = vmul.f32 -1.442695, %v3730_v41 }
 0x1b5   :  { %2637 = vrcp.f32 %v1999_v27  ;;  %v1998_v51 = vadd.f32 1.0, %v2634_v46  ;;  %v2391_v54 = vmul.f32 -1.442695, %v3737_v45 }
 0x1b6   :  { %2639 = vrcp.f32 %v1966_v49 }
 0x1b7   :  { %2641 = vrcp.f32 %v1998_v51 }
 0x1b8   :  { %2643 = vpow2.f32 %v2360_v50 }
 0x1b9   :  { %2645 = vpow2.f32 %v2392_v52 }
 0x1ba   :  { %2647 = vpow2.f32 %v2359_v53 }
 0x1bb   :  { %2649 = vpow2.f32 %v2391_v54 }
 0x1bd   :  { %v2501_v56 = vpop.f32.mrb[8].mxu0  ;;  %v2549_v57 = vpop.f32.mrb[8].mxu1 }
 0x1be   :  { %v2636_v55 = vpop.eup %2635  ;;  %v1644_v60 = vmul.f32 %v2501_v56, %v3592_v30  ;;  %v1676_v61 = vmul.f32 %v2549_v57, %v3592_v30  ;;  %v1349_v62 = vpop.f32.mrb[9].mxu0 }
 0x1bf   :  { %v2638_v58 = vpop.eup %2637  ;;  %v2159_v59 = vmul.f32 %v2636_v55, %v3684_v5  ;;  %v1509_v63 = vpop.f32.mrb[9].mxu1  ;;  %v1643_v43 = vmul.f32 %v3592_v30, %v1349_v62 }
 0x1c0   :  { %v2640_v0 = vpop.eup %2639  ;;  %v2191_v1 = vmul.f32 %v2638_v58, %v3687_v6  ;;  %v1675_v44 = vmul.f32 %v3592_v30, %v1509_v63  ;;  %v3755_v4 = vadd.f32 %v3597_v33, %v1644_v60  ;;  %v3763_v6 = vadd.f32 %v3597_v33, %v1676_v61 }
 0x1c1   :  { %v2642_v2 = vpop.eup %2641  ;;  %2223 = vst.msk [vmem:[%s4261_s4 + $0x28] sm:$0xff] %vm146_vm0, %v2159_v59  ;;  %v2158_v3 = vmul.f32 %v2640_v0, %v3694_v8  ;;  %v3770_v8 = vadd.f32 %v3597_v33, %v1643_v43 }
 0x1c2   :  { %v2644_v47 = vpop.eup %2643  ;;  %2255 = vst.msk [vmem:[%s4261_s4 + $0x128] sm:$0xff] %vm146_vm0, %v2191_v1  ;;  %v2190_v5 = vmul.f32 %v2642_v2, %v3697_v9  ;;  %v3777_v11 = vadd.f32 %v3597_v33, %v1675_v44  ;;  %v2362_v14 = vmul.f32 -1.442695, %v3755_v4  ;;  %v2394_v16 = vmul.f32 -1.442695, %v3763_v6 }
 0x1c3   :  { %v2646_v7 = vpop.eup %2645  ;;  %2222 = vst.msk [vmem:[%s4261_s4 + $0x20] sm:$0xff] %vm146_vm0, %v2158_v3  ;;  %v1969_v48 = vadd.f32 1.0, %v2644_v47  ;;  %v2361_v17 = vmul.f32 -1.442695, %v3770_v8 }
 0x1c4   :  { %v2648_v10 = vpop.eup %2647  ;;  %2254 = vst.msk [vmem:[%s4261_s4 + $0x120] sm:$0xff] %vm146_vm0, %v2190_v5  ;;  %v2001_v9 = vadd.f32 1.0, %v2646_v7  ;;  %v2393_v18 = vmul.f32 -1.442695, %v3777_v11 }
 0x1c5   :  { %v2650_v12 = vpop.eup %2649  ;;  %2651 = vrcp.f32 %v1969_v48  ;;  %v1968_v13 = vadd.f32 1.0, %v2648_v10 }
 0x1c6   :  { %2653 = vrcp.f32 %v2001_v9  ;;  %v2000_v15 = vadd.f32 1.0, %v2650_v12 }
 0x1c7   :  { %2655 = vrcp.f32 %v1968_v13 }
 0x1c8   :  { %2657 = vrcp.f32 %v2000_v15 }
 0x1c9   :  { %2659 = vpow2.f32 %v2362_v14 }
 0x1ca   :  { %2661 = vpow2.f32 %v2394_v16 }
 0x1cb   :  { %2663 = vpow2.f32 %v2361_v17 }
 0x1cc   :  { %2665 = vpow2.f32 %v2393_v18  ;;  %v2552_v19 = vpop.f32.mrb[10].mxu1 }
 0x1cd   :  { %v2504_v22 = vpop.f32.mrb[10].mxu0  ;;  %v1678_v23 = vmul.f32 %v2552_v19, %v3592_v30  ;;  %v1519_v24 = vpop.f32.mrb[11].mxu1 }
 0x1ce   :  { %v1646_v28 = vmul.f32 %v2504_v22, %v3592_v30  ;;  %v1359_v29 = vpop.f32.mrb[11].mxu0  ;;  %v1677_v31 = vmul.f32 %v3592_v30, %v1519_v24 }
 0x1cf   :  { %v2652_v25 = vpop.eup %2651  ;;  %v3788_v35 = vadd.f32 %v3597_v33, %v1678_v23  ;;  %v1645_v20 = vmul.f32 %v3592_v30, %v1359_v29 }
 0x1d0   :  { %v2654_v32 = vpop.eup %2653  ;;  %v2161_v34 = vmul.f32 %v2652_v25, %v3720_v38  ;;  %v3793_v21 = vadd.f32 %v3597_v33, %v1646_v28  ;;  %v3811_v49 = vadd.f32 %v3597_v33, %v1677_v31 }
 0x1d1   :  { %v2656_v36 = vpop.eup %2655  ;;  %v2193_v37 = vmul.f32 %v2654_v32, %v3723_v39  ;;  %v2396_v38 = vmul.f32 -1.442695, %v3788_v35  ;;  %v3802_v42 = vadd.f32 %v3597_v33, %v1645_v20 }
 0x1d2   :  { %v2658_v40 = vpop.eup %2657  ;;  %2225 = vst.msk [vmem:[%s4261_s4 + $0x38] sm:$0xff] %vm146_vm0, %v2161_v34  ;;  %v2160_v26 = vmul.f32 %v2656_v36, %v3730_v41  ;;  %v2364_v46 = vmul.f32 -1.442695, %v3793_v21  ;;  %v2395_v56 = vmul.f32 -1.442695, %v3811_v49 }
 0x1d3   :  { %v2660_v27 = vpop.eup %2659  ;;  %2257 = vst.msk [vmem:[%s4261_s4 + $0x138] sm:$0xff] %vm146_vm0, %v2193_v37  ;;  %v2192_v39 = vmul.f32 %v2658_v40, %v3737_v45  ;;  %2667 = vpow2.f32 %v2396_v38  ;;  %v2363_v54 = vmul.f32 -1.442695, %v3802_v42 }
 0x1d4   :  { %v2662_v50 = vpop.eup %2661  ;;  %2224 = vst.msk [vmem:[%s4261_s4 + $0x30] sm:$0xff] %vm146_vm0, %v2160_v26  ;;  %v1971_v41 = vadd.f32 1.0, %v2660_v27  ;;  %2669 = vpow2.f32 %v2364_v46 }
 0x1d5   :  { %v2664_v51 = vpop.eup %2663  ;;  %2256 = vst.msk [vmem:[%s4261_s4 + $0x130] sm:$0xff] %vm146_vm0, %v2192_v39  ;;  %v2003_v45 = vadd.f32 1.0, %v2662_v50 }
 0x1d6   :  { %v2666_v52 = vpop.eup %2665  ;;  %2671 = vrcp.f32 %v1971_v41  ;;  %v1970_v53 = vadd.f32 1.0, %v2664_v51 }
 0x1d7   :  { %2673 = vrcp.f32 %v2003_v45  ;;  %v2002_v55 = vadd.f32 1.0, %v2666_v52 }
 0x1d8   :  { %2675 = vrcp.f32 %v1970_v53 }
 0x1d9   :  { %2677 = vrcp.f32 %v2002_v55 }
 0x1da   :  { %2679 = vpow2.f32 %v2363_v54 }
 0x1db   :  { %2681 = vpow2.f32 %v2395_v56 }
 0x1dc   :  { %v2555_v57 = vpop.f32.mrb[12].mxu1 }
 0x1dd   :  { %v2668_v58 = vpop.eup %2667  ;;  %v2507_v59 = vpop.f32.mrb[12].mxu0  ;;  %v1680_v60 = vmul.f32 %v2555_v57, %v3592_v30 }
 0x1de   :  { %v1529_v61 = vpop.f32.mrb[13].mxu1  ;;  %v2670_v62 = vpop.eup %2669  ;;  %v2005_v63 = vadd.f32 1.0, %v2668_v58  ;;  %v1648_v0 = vmul.f32 %v2507_v59, %v3592_v30 }
 0x1df   :  { %v1369_v1 = vpop.f32.mrb[13].mxu0  ;;  %v1679_v43 = vmul.f32 %v3592_v30, %v1529_v61  ;;  %v1973_v2 = vadd.f32 1.0, %v2670_v62  ;;  %v3827_v3 = vadd.f32 %v3597_v33, %v1680_v60 }
 0x1e0   :  { %v2672_v44 = vpop.eup %2671  ;;  %v1647_v47 = vmul.f32 %v3592_v30, %v1369_v1  ;;  %2683 = vrcp.f32 %v2005_v63  ;;  %v3832_v48 = vadd.f32 %v3597_v33, %v1648_v0 }
 0x1e1   :  { %v2674_v5 = vpop.eup %2673  ;;  %v2163_v7 = vmul.f32 %v2672_v44, %v3755_v4  ;;  %v3835_v10 = vadd.f32 %v3597_v33, %v1679_v43  ;;  %2685 = vrcp.f32 %v1973_v2  ;;  %v2398_v13 = vmul.f32 -1.442695, %v3827_v3 }
 0x1e2   :  { %v2676_v9 = vpop.eup %2675  ;;  %v2195_v12 = vmul.f32 %v2674_v5, %v3763_v6  ;;  %v3840_v14 = vadd.f32 %v3597_v33, %v1647_v47  ;;  %v2366_v16 = vmul.f32 -1.442695, %v3832_v48 }
 0x1e3   :  { %v2678_v15 = vpop.eup %2677  ;;  %2227 = vst.msk [vmem:[%s4261_s4 + $0x48] sm:$0xff] %vm146_vm0, %v2163_v7  ;;  %v2162_v4 = vmul.f32 %v2676_v9, %v3770_v8  ;;  %2687 = vpow2.f32 %v2398_v13  ;;  %v2397_v22 = vmul.f32 -1.442695, %v3835_v10 }
 0x1e4   :  { %v2680_v17 = vpop.eup %2679  ;;  %2259 = vst.msk [vmem:[%s4261_s4 + $0x148] sm:$0xff] %vm146_vm0, %v2195_v12  ;;  %v2194_v6 = vmul.f32 %v2678_v15, %v3777_v11  ;;  %v2365_v18 = vmul.f32 -1.442695, %v3840_v14  ;;  %2689 = vpow2.f32 %v2366_v16 }
 0x1e5   :  { %v2682_v19 = vpop.eup %2681  ;;  %2226 = vst.msk [vmem:[%s4261_s4 + $0x40] sm:$0xff] %vm146_vm0, %v2162_v4  ;;  %v1972_v8 = vadd.f32 1.0, %v2680_v17 }
 0x1e6   :  { %2258 = vst.msk [vmem:[%s4261_s4 + $0x140] sm:$0xff] %vm146_vm0, %v2194_v6  ;;  %v2004_v23 = vadd.f32 1.0, %v2682_v19  ;;  %2691 = vpow2.f32 %v2365_v18 }
 0x1e7   :  { %2693 = vrcp.f32 %v1972_v8 }
 0x1e8   :  { %2695 = vrcp.f32 %v2004_v23 }
 0x1e9   :  { %2697 = vpow2.f32 %v2397_v22 }
 0x1ea   :  { %v2684_v11 = vpop.eup %2683 }
 0x1eb   :  { %v2686_v24 = vpop.eup %2685  ;;  %v2197_v25 = vmul.f32 %v2684_v11, %v3788_v35 }
 0x1ec   :  { %v2165_v28 = vmul.f32 %v2686_v24, %v3793_v21  ;;  %v2558_v29 = vpop.f32.mrb[14].mxu1 }
 0x1ed   :  { %v2688_v31 = vpop.eup %2687  ;;  %2261 = vst.msk [vmem:[%s4261_s4 + $0x158] sm:$0xff] %vm146_vm0, %v2197_v25  ;;  %v2510_v32 = vpop.f32.mrb[14].mxu0  ;;  %v1682_v34 = vmul.f32 %v2558_v29, %v3592_v30 }
 0x1ee   :  { %v1539_v20 = vpop.f32.mrb[15].mxu1  ;;  %v2690_v36 = vpop.eup %2689  ;;  %2229 = vst.msk [vmem:[%s4261_s4 + $0x58] sm:$0xff] %vm146_vm0, %v2165_v28  ;;  %v2007_v35 = vadd.f32 1.0, %v2688_v31  ;;  %v1650_v37 = vmul.f32 %v2510_v32, %v3592_v30 }
 0x1ef   :  { %v1379_v21 = vpop.f32.mrb[15].mxu0  ;;  %v1681_v40 = vmul.f32 %v3592_v30, %v1539_v20  ;;  %v1975_v38 = vadd.f32 1.0, %v2690_v36  ;;  %v3877_v27 = vadd.f32 %v3597_v33, %v1682_v34 }
 0x1f0   :  { %v2692_v26 = vpop.eup %2691  ;;  %v1649_v39 = vmul.f32 %v3592_v30, %v1379_v21  ;;  %2699 = vrcp.f32 %v2007_v35  ;;  %v3881_v41 = vadd.f32 %v3597_v33, %v1650_v37 }
 0x1f1   :  { %v2694_v46 = vpop.eup %2693  ;;  %v1974_v50 = vadd.f32 1.0, %v2692_v26  ;;  %v3884_v51 = vadd.f32 %v3597_v33, %v1681_v40  ;;  %2701 = vrcp.f32 %v1975_v38  ;;  %v2400_v53 = vmul.f32 -1.442695, %v3877_v27 }
 0x1f2   :  { %v2696_v45 = vpop.eup %2695  ;;  %v2164_v52 = vmul.f32 %v2694_v46, %v3802_v42  ;;  %v3889_v54 = vadd.f32 %v3597_v33, %v1649_v39  ;;  %v2368_v57 = vmul.f32 -1.442695, %v3881_v41 }
 0x1f3   :  { %v2698_v55 = vpop.eup %2697  ;;  %v2196_v56 = vmul.f32 %v2696_v45, %v3811_v49  ;;  %2703 = vrcp.f32 %v1974_v50  ;;  %v2399_v59 = vmul.f32 -1.442695, %v3884_v51 }
 0x1f4   :  { %2228 = vst.msk [vmem:[%s4261_s4 + $0x50] sm:$0xff] %vm146_vm0, %v2164_v52  ;;  %v2006_v58 = vadd.f32 1.0, %v2698_v55  ;;  %2705 = vpow2.f32 %v2400_v53  ;;  %v2367_v42 = vmul.f32 -1.442695, %v3889_v54 }
 0x1f5   :  { %2260 = vst.msk [vmem:[%s4261_s4 + $0x150] sm:$0xff] %vm146_vm0, %v2196_v56  ;;  %2707 = vpow2.f32 %v2368_v57 }
 0x1f6   :  { %2709 = vrcp.f32 %v2006_v58 }
 0x1f7   :  { %2711 = vpow2.f32 %v2367_v42 }
 0x1f8   :  { %2713 = vpow2.f32 %v2399_v59 }
 0x1fa   :  { %v2700_v49 = vpop.eup %2699 }
 0x1fb   :  { %v2702_v60 = vpop.eup %2701  ;;  %v2199_v61 = vmul.f32 %v2700_v49, %v3827_v3 }
 0x1fc   :  { %v2167_v63 = vmul.f32 %v2702_v60, %v3832_v48  ;;  %v2513_v0 = vpop.f32.mrb[16].mxu0  ;;  %v2561_v1 = vpop.f32.mrb[16].mxu1 }
 0x1fd   :  { %v2704_v62 = vpop.eup %2703  ;;  %2263 = vst.msk [vmem:[%s4261_s4 + $0x168] sm:$0xff] %vm146_vm0, %v2199_v61  ;;  %v1652_v2 = vmul.f32 %v2513_v0, %v3592_v30  ;;  %v1684_v47 = vmul.f32 %v2561_v1, %v3592_v30  ;;  %v1389_v5 = vpop.f32.mrb[17].mxu0 }
 0x1fe   :  { %v2706_v43 = vpop.eup %2705  ;;  %v2166_v44 = vmul.f32 %v2704_v62, %v3840_v14  ;;  %v1549_v7 = vpop.f32.mrb[17].mxu1  ;;  %2231 = vst.msk [vmem:[%s4261_s4 + $0x68] sm:$0xff] %vm146_vm0, %v2167_v63  ;;  %v1651_v9 = vmul.f32 %v3592_v30, %v1389_v5 }
 0x1ff   :  { %v2708_v3 = vpop.eup %2707  ;;  %v2009_v48 = vadd.f32 1.0, %v2706_v43  ;;  %v1683_v12 = vmul.f32 %v3592_v30, %v1549_v7  ;;  %v3923_v15 = vadd.f32 %v3597_v33, %v1652_v2  ;;  %v3926_v4 = vadd.f32 %v3597_v33, %v1684_v47 }
 0x200   :  { %v2710_v13 = vpop.eup %2709  ;;  %2230 = vst.msk [vmem:[%s4261_s4 + $0x60] sm:$0xff] %vm146_vm0, %v2166_v44  ;;  %v1977_v14 = vadd.f32 1.0, %v2708_v3  ;;  %v3930_v6 = vadd.f32 %v3597_v33, %v1651_v9 }
 0x201   :  { %v2712_v16 = vpop.eup %2711  ;;  %v2198_v17 = vmul.f32 %v2710_v13, %v3835_v10  ;;  %2715 = vrcp.f32 %v2009_v48  ;;  %v3933_v18 = vadd.f32 %v3597_v33, %v1683_v12  ;;  %v2370_v22 = vmul.f32 -1.442695, %v3923_v15 }
 0x202   :  { %v2714_v19 = vpop.eup %2713  ;;  %2717 = vrcp.f32 %v1977_v14  ;;  %v1976_v8 = vadd.f32 1.0, %v2712_v16  ;;  %v2402_v10 = vmul.f32 -1.442695, %v3926_v4  ;;  %v2369_v11 = vmul.f32 -1.442695, %v3930_v6 }
 0x203   :  { %2262 = vst.msk [vmem:[%s4261_s4 + $0x160] sm:$0xff] %vm146_vm0, %v2198_v17  ;;  %v2008_v23 = vadd.f32 1.0, %v2714_v19  ;;  %v2401_v24 = vmul.f32 -1.442695, %v3933_v18 }
 0x204   :  { %2719 = vrcp.f32 %v1976_v8 }
 0x205   :  { %2721 = vrcp.f32 %v2008_v23 }
 0x206   :  { %2723 = vpow2.f32 %v2370_v22 }
 0x207   :  { %2725 = vpow2.f32 %v2402_v10 }
 0x208   :  { %2727 = vpow2.f32 %v2369_v11 }
 0x209   :  { %2729 = vpow2.f32 %v2401_v24 }
 0x20b   :  { %v2716_v25 = vpop.eup %2715 }
 0x20c   :  { %v2718_v28 = vpop.eup %2717  ;;  %v2201_v29 = vmul.f32 %v2716_v25, %v3877_v27  ;;  %v2516_v32 = vpop.f32.mrb[18].mxu0 }
 0x20d   :  { %v2169_v31 = vmul.f32 %v2718_v28, %v3881_v41  ;;  %v2564_v34 = vpop.f32.mrb[18].mxu1  ;;  %v1654_v36 = vmul.f32 %v2516_v32, %v3592_v30  ;;  %v1399_v37 = vpop.f32.mrb[19].mxu0 }
 0x20e   :  { %v2720_v20 = vpop.eup %2719  ;;  %2265 = vst.msk [vmem:[%s4261_s4 + $0x178] sm:$0xff] %vm146_vm0, %v2201_v29  ;;  %v1686_v35 = vmul.f32 %v2564_v34, %v3592_v30  ;;  %v1559_v21 = vpop.f32.mrb[19].mxu1  ;;  %v1653_v38 = vmul.f32 %v3592_v30, %v1399_v37 }
 0x20f   :  { %v2722_v40 = vpop.eup %2721  ;;  %2233 = vst.msk [vmem:[%s4261_s4 + $0x78] sm:$0xff] %vm146_vm0, %v2169_v31  ;;  %v2168_v26 = vmul.f32 %v2720_v20, %v3889_v54  ;;  %v1685_v27 = vmul.f32 %v3592_v30, %v1559_v21  ;;  %v3960_v50 = vadd.f32 %v3597_v33, %v1654_v36 }
 0x210   :  { %v2724_v39 = vpop.eup %2723  ;;  %v2200_v46 = vmul.f32 %v2722_v40, %v3884_v51  ;;  %v3963_v41 = vadd.f32 %v3597_v33, %v1686_v35  ;;  %v3970_v53 = vadd.f32 %v3597_v33, %v1653_v38 }
 0x211   :  { %v2726_v45 = vpop.eup %2725  ;;  %2232 = vst.msk [vmem:[%s4261_s4 + $0x70] sm:$0xff] %vm146_vm0, %v2168_v26  ;;  %v1979_v52 = vadd.f32 1.0, %v2724_v39  ;;  %v3977_v55 = vadd.f32 %v3597_v33, %v1685_v27  ;;  %v2372_v58 = vmul.f32 -1.442695, %v3960_v50 }
 0x212   :  { %v2728_v54 = vpop.eup %2727  ;;  %2264 = vst.msk [vmem:[%s4261_s4 + $0x170] sm:$0xff] %vm146_vm0, %v2200_v46  ;;  %v2011_v51 = vadd.f32 1.0, %v2726_v45  ;;  %v2404_v59 = vmul.f32 -1.442695, %v3963_v41  ;;  %v2371_v49 = vmul.f32 -1.442695, %v3970_v53 }
 0x213   :  { %v2730_v56 = vpop.eup %2729  ;;  %2731 = vrcp.f32 %v1979_v52  ;;  %v1978_v57 = vadd.f32 1.0, %v2728_v54  ;;  %v2403_v60 = vmul.f32 -1.442695, %v3977_v55 }
 0x214   :  { %2733 = vrcp.f32 %v2011_v51  ;;  %v2010_v42 = vadd.f32 1.0, %v2730_v56 }
 0x215   :  { %2735 = vrcp.f32 %v1978_v57 }
 0x216   :  { %2737 = vrcp.f32 %v2010_v42 }
 0x217   :  { %2739 = vpow2.f32 %v2372_v58 }
 0x218   :  { %2741 = vpow2.f32 %v2404_v59 }
 0x219   :  { %2743 = vpow2.f32 %v2371_v49 }
 0x21a   :  { %2745 = vpow2.f32 %v2403_v60 }
 0x21c   :  { %v2519_v62 = vpop.f32.mrb[20].mxu0  ;;  %v2567_v63 = vpop.f32.mrb[20].mxu1 }
 0x21d   :  { %v2732_v61 = vpop.eup %2731  ;;  %v1656_v43 = vmul.f32 %v2519_v62, %v3592_v30  ;;  %v1688_v44 = vmul.f32 %v2567_v63, %v3592_v30  ;;  %v1409_v2 = vpop.f32.mrb[21].mxu0 }
 0x21e   :  { %v2734_v0 = vpop.eup %2733  ;;  %v2171_v1 = vmul.f32 %v2732_v61, %v3923_v15  ;;  %v1569_v47 = vpop.f32.mrb[21].mxu1  ;;  %v1655_v3 = vmul.f32 %v3592_v30, %v1409_v2 }
 0x21f   :  { %v2736_v5 = vpop.eup %2735  ;;  %v2203_v7 = vmul.f32 %v2734_v0, %v3926_v4  ;;  %v1687_v48 = vmul.f32 %v3592_v30, %v1569_v47  ;;  %v3995_v13 = vadd.f32 %v3597_v33, %v1656_v43  ;;  %v4003_v4 = vadd.f32 %v3597_v33, %v1688_v44 }
 0x220   :  { %v2738_v9 = vpop.eup %2737  ;;  %2235 = vst.msk [vmem:[%s4261_s4 + $0x88] sm:$0xff] %vm146_vm0, %v2171_v1  ;;  %v2170_v12 = vmul.f32 %v2736_v5, %v3930_v6  ;;  %v4010_v6 = vadd.f32 %v3597_v33, %v1655_v3  ;;  %v4071_v1 = vld [vmem:[%s4259_s2] ss:$0 sm:$0xff] }
 0x221   :  { %v2740_v14 = vpop.eup %2739  ;;  %2267 = vst.msk [vmem:[%s4261_s4 + $0x188] sm:$0xff] %vm146_vm0, %v2203_v7  ;;  %v2202_v15 = vmul.f32 %v2738_v9, %v3933_v18  ;;  %v4017_v8 = vadd.f32 %v3597_v33, %v1687_v48  ;;  %v2374_v10 = vmul.f32 -1.442695, %v3995_v13  ;;  %v2406_v24 = vmul.f32 -1.442695, %v4003_v4 }
 0x222   :  { %v2742_v16 = vpop.eup %2741  ;;  %2234 = vst.msk [vmem:[%s4261_s4 + $0x80] sm:$0xff] %vm146_vm0, %v2170_v12  ;;  %v1981_v17 = vadd.f32 1.0, %v2740_v14  ;;  %v2373_v25 = vmul.f32 -1.442695, %v4010_v6 }
 0x223   :  { %v2744_v19 = vpop.eup %2743  ;;  %2266 = vst.msk [vmem:[%s4261_s4 + $0x180] sm:$0xff] %vm146_vm0, %v2202_v15  ;;  %v2013_v18 = vadd.f32 1.0, %v2742_v16  ;;  %v2405_v28 = vmul.f32 -1.442695, %v4017_v8 }
 0x224   :  { %v2746_v22 = vpop.eup %2745  ;;  %2747 = vrcp.f32 %v1981_v17  ;;  %v1980_v23 = vadd.f32 1.0, %v2744_v19 }
 0x225   :  { %2749 = vrcp.f32 %v2013_v18  ;;  %v2012_v11 = vadd.f32 1.0, %v2746_v22 }
 0x226   :  { %2751 = vrcp.f32 %v1980_v23 }
 0x227   :  { %2753 = vrcp.f32 %v2012_v11 }
 0x228   :  { %2755 = vpow2.f32 %v2374_v10 }
 0x229   :  { %2757 = vpow2.f32 %v2406_v24 }
 0x22a   :  { %2759 = vpow2.f32 %v2373_v25 }
 0x22b   :  { %2761 = vpow2.f32 %v2405_v28 }
 0x22c   :  { %v2522_v29 = vpop.f32.mrb[22].mxu0  ;;  %v2570_v31 = vpop.f32.mrb[22].mxu1 }
 0x22d   :  { %v1658_v34 = vmul.f32 %v2522_v29, %v3592_v30  ;;  %v1690_v20 = vmul.f32 %v2570_v31, %v3592_v30  ;;  %v1419_v36 = vpop.f32.mrb[23].mxu0  ;;  %v1579_v35 = vpop.f32.mrb[23].mxu1 }
 0x22e   :  { %v2748_v32 = vpop.eup %2747  ;;  %v1657_v40 = vmul.f32 %v3592_v30, %v1419_v36  ;;  %v1689_v26 = vmul.f32 %v3592_v30, %v1579_v35 }
 0x22f   :  { %v2750_v37 = vpop.eup %2749  ;;  %v2173_v21 = vmul.f32 %v2748_v32, %v3960_v50  ;;  %v4030_v39 = vadd.f32 %v3597_v33, %v1658_v34  ;;  %v4040_v50 = vld [vmem:[%s4260_s3] ss:$0 sm:$0xff] }
 0x230   :  { %v2752_v38 = vpop.eup %2751  ;;  %v2205_v27 = vmul.f32 %v2750_v37, %v3963_v41  ;;  %v4043_v30 = vadd.f32 %v4040_v50, %v1690_v20  ;;  %v4059_v56 = vadd.f32 %v4040_v50, %v1689_v26 }
 0x231   :  { %v2754_v46 = vpop.eup %2753  ;;  %2237 = vst.msk [vmem:[%s4261_s4 + $0x98] sm:$0xff] %vm146_vm0, %v2173_v21  ;;  %v2172_v45 = vmul.f32 %v2752_v38, %v3970_v53  ;;  %v2376_v52 = vmul.f32 -1.442695, %v4030_v39  ;;  %v4052_v53 = vadd.f32 %v4040_v50, %v1657_v40 }
 0x232   :  { %v2756_v41 = vpop.eup %2755  ;;  %2269 = vst.msk [vmem:[%s4261_s4 + $0x198] sm:$0xff] %vm146_vm0, %v2205_v27  ;;  %v2204_v33 = vmul.f32 %v2754_v46, %v3977_v55  ;;  %v2408_v59 = vmul.f32 -1.442695, %v4043_v30  ;;  %v2407_v61 = vmul.f32 -1.442695, %v4059_v56 }
 0x233   :  { %v2758_v54 = vpop.eup %2757  ;;  %2236 = vst.msk [vmem:[%s4261_s4 + $0x90] sm:$0xff] %vm146_vm0, %v2172_v45  ;;  %v1983_v51 = vadd.f32 1.0, %v2756_v41  ;;  %2763 = vpow2.f32 %v2376_v52  ;;  %v2375_v60 = vmul.f32 -1.442695, %v4052_v53 }
 0x234   :  { %v2760_v57 = vpop.eup %2759  ;;  %2268 = vst.msk [vmem:[%s4261_s4 + $0x190] sm:$0xff] %vm146_vm0, %v2204_v33  ;;  %v2015_v55 = vadd.f32 1.0, %v2758_v54 }
 0x235   :  { %v2762_v58 = vpop.eup %2761  ;;  %2765 = vrcp.f32 %v1983_v51  ;;  %v1982_v42 = vadd.f32 1.0, %v2760_v57 }
 0x236   :  { %2767 = vrcp.f32 %v2015_v55  ;;  %v2014_v49 = vadd.f32 1.0, %v2762_v58 }
 0x237   :  { %2769 = vrcp.f32 %v1982_v42 }
 0x238   :  { %2771 = vrcp.f32 %v2014_v49 }
 0x239   :  { %2773 = vpow2.f32 %v2408_v59 }
 0x23a   :  { %2775 = vpow2.f32 %v2375_v60 }
 0x23b   :  { %2777 = vpow2.f32 %v2407_v61 }
 0x23c   :  { %v2573_v62 = vpop.f32.mrb[24].mxu1 }
 0x23d   :  { %v2764_v63 = vpop.eup %2763  ;;  %v2525_v0 = vpop.f32.mrb[24].mxu0  ;;  %v1692_v43 = vmul.f32 %v4071_v1, %v2573_v62 }
 0x23e   :  { %v1589_v44 = vpop.f32.mrb[25].mxu1  ;;  %v1985_v47 = vadd.f32 1.0, %v2764_v63  ;;  %v1660_v5 = vmul.f32 %v4071_v1, %v2525_v0  ;;  %v1429_v7 = vpop.f32.mrb[25].mxu0 }
 0x23f   :  { %v2766_v2 = vpop.eup %2765  ;;  %v1691_v3 = vmul.f32 %v4071_v1, %v1589_v44  ;;  %v4078_v12 = vadd.f32 %v4040_v50, %v1692_v43  ;;  %v1659_v14 = vmul.f32 %v4071_v1, %v1429_v7 }
 0x240   :  { %v2768_v48 = vpop.eup %2767  ;;  %v2175_v9 = vmul.f32 %v2766_v2, %v3995_v13  ;;  %2779 = vrcp.f32 %v1985_v47  ;;  %v4083_v17 = vadd.f32 %v4040_v50, %v1660_v5 }
 0x241   :  { %v2770_v15 = vpop.eup %2769  ;;  %v2207_v16 = vmul.f32 %v2768_v48, %v4003_v4  ;;  %v2410_v18 = vmul.f32 -1.442695, %v4078_v12  ;;  %v4092_v22 = vadd.f32 %v4040_v50, %v1659_v14  ;;  %v4095_v23 = vadd.f32 %v4040_v50, %v1691_v3 }
 0x242   :  { %v2772_v19 = vpop.eup %2771  ;;  %2239 = vst.msk [vmem:[%s4261_s4 + $0xa8] sm:$0xff] %vm146_vm0, %v2175_v9  ;;  %v2174_v13 = vmul.f32 %v2770_v15, %v4010_v6  ;;  %v2378_v11 = vmul.f32 -1.442695, %v4083_v17 }
 0x243   :  { %v2774_v4 = vpop.eup %2773  ;;  %2271 = vst.msk [vmem:[%s4261_s4 + $0x1a8] sm:$0xff] %vm146_vm0, %v2207_v16  ;;  %v2206_v10 = vmul.f32 %v2772_v19, %v4017_v8  ;;  %2781 = vpow2.f32 %v2410_v18  ;;  %v2377_v8 = vmul.f32 -1.442695, %v4092_v22  ;;  %v2409_v31 = vmul.f32 -1.442695, %v4095_v23 }
 0x244   :  { %v2776_v24 = vpop.eup %2775  ;;  %2238 = vst.msk [vmem:[%s4261_s4 + $0xa0] sm:$0xff] %vm146_vm0, %v2174_v13  ;;  %v2017_v6 = vadd.f32 1.0, %v2774_v4  ;;  %2783 = vpow2.f32 %v2378_v11 }
 0x245   :  { %v2778_v25 = vpop.eup %2777  ;;  %2270 = vst.msk [vmem:[%s4261_s4 + $0x1a0] sm:$0xff] %vm146_vm0, %v2206_v10  ;;  %v1984_v28 = vadd.f32 1.0, %v2776_v24 }
 0x246   :  { %2785 = vrcp.f32 %v2017_v6  ;;  %v2016_v29 = vadd.f32 1.0, %v2778_v25 }
 0x247   :  { %2787 = vrcp.f32 %v1984_v28 }
 0x248   :  { %2789 = vrcp.f32 %v2016_v29 }
 0x249   :  { %2791 = vpow2.f32 %v2377_v8 }
 0x24a   :  { %2793 = vpow2.f32 %v2409_v31  ;;  %v2780_v32 = vpop.eup %2779 }
 0x24b   :  { %v2177_v34 = vmul.f32 %v2780_v32, %v4030_v39 }
 0x24c   :  { %v2576_v20 = vpop.f32.mrb[26].mxu1 }
 0x24d   :  { %v2782_v36 = vpop.eup %2781  ;;  %2241 = vst.msk [vmem:[%s4261_s4 + $0xb8] sm:$0xff] %vm146_vm0, %v2177_v34  ;;  %v2528_v35 = vpop.f32.mrb[26].mxu0  ;;  %v1694_v37 = vmul.f32 %v4071_v1, %v2576_v20 }
 0x24e   :  { %v1599_v21 = vpop.f32.mrb[27].mxu1  ;;  %v2784_v40 = vpop.eup %2783  ;;  %v2019_v26 = vadd.f32 1.0, %v2782_v36  ;;  %v1662_v38 = vmul.f32 %v4071_v1, %v2528_v35 }
 0x24f   :  { %v1439_v27 = vpop.f32.mrb[27].mxu0  ;;  %v1693_v46 = vmul.f32 %v4071_v1, %v1599_v21  ;;  %v1987_v39 = vadd.f32 1.0, %v2784_v40  ;;  %v4122_v41 = vadd.f32 %v4040_v50, %v1694_v37 }
 0x250   :  { %v2786_v45 = vpop.eup %2785  ;;  %v1661_v33 = vmul.f32 %v4071_v1, %v1439_v27  ;;  %2795 = vrcp.f32 %v2019_v26  ;;  %v4127_v51 = vadd.f32 %v4040_v50, %v1662_v38 }
 0x251   :  { %v2788_v52 = vpop.eup %2787  ;;  %v2209_v54 = vmul.f32 %v2786_v45, %v4043_v30  ;;  %v4130_v57 = vadd.f32 %v4040_v50, %v1693_v46  ;;  %2797 = vrcp.f32 %v1987_v39  ;;  %v2412_v42 = vmul.f32 -1.442695, %v4122_v41 }
 0x252   :  { %v2790_v55 = vpop.eup %2789  ;;  %v2176_v58 = vmul.f32 %v2788_v52, %v4052_v53  ;;  %v4135_v59 = vadd.f32 %v4040_v50, %v1661_v33  ;;  %v2380_v60 = vmul.f32 -1.442695, %v4127_v51 }
 0x253   :  { %v2792_v49 = vpop.eup %2791  ;;  %2273 = vst.msk [vmem:[%s4261_s4 + $0x1b8] sm:$0xff] %vm146_vm0, %v2209_v54  ;;  %v2208_v30 = vmul.f32 %v2790_v55, %v4059_v56  ;;  %2799 = vpow2.f32 %v2412_v42  ;;  %v2411_v56 = vmul.f32 -1.442695, %v4130_v57 }
 0x254   :  { %v2794_v61 = vpop.eup %2793  ;;  %2240 = vst.msk [vmem:[%s4261_s4 + $0xb0] sm:$0xff] %vm146_vm0, %v2176_v58  ;;  %v1986_v53 = vadd.f32 1.0, %v2792_v49  ;;  %v2379_v62 = vmul.f32 -1.442695, %v4135_v59  ;;  %2801 = vpow2.f32 %v2380_v60 }
 0x255   :  { %2272 = vst.msk [vmem:[%s4261_s4 + $0x1b0] sm:$0xff] %vm146_vm0, %v2208_v30  ;;  %v2018_v63 = vadd.f32 1.0, %v2794_v61 }
 0x256   :  { %2803 = vrcp.f32 %v1986_v53 }
 0x257   :  { %2805 = vrcp.f32 %v2018_v63 }
 0x258   :  { %2807 = vpow2.f32 %v2379_v62 }
 0x259   :  { %2809 = vpow2.f32 %v2411_v56 }
 0x25a   :  { %v2796_v0 = vpop.eup %2795 }
 0x25b   :  { %v2798_v43 = vpop.eup %2797  ;;  %v2211_v44 = vmul.f32 %v2796_v0, %v4078_v12 }
 0x25c   :  { %v2179_v2 = vmul.f32 %v2798_v43, %v4083_v17  ;;  %v2579_v47 = vpop.f32.mrb[28].mxu1 }
 0x25d   :  { %v2800_v5 = vpop.eup %2799  ;;  %2275 = vst.msk [vmem:[%s4261_s4 + $0x1c8] sm:$0xff] %vm146_vm0, %v2211_v44  ;;  %v2531_v7 = vpop.f32.mrb[28].mxu0  ;;  %v1696_v3 = vmul.f32 %v4071_v1, %v2579_v47 }
 0x25e   :  { %v1609_v48 = vpop.f32.mrb[29].mxu1  ;;  %v2802_v9 = vpop.eup %2801  ;;  %2243 = vst.msk [vmem:[%s4261_s4 + $0xc8] sm:$0xff] %vm146_vm0, %v2179_v2  ;;  %v2021_v12 = vadd.f32 1.0, %v2800_v5  ;;  %v1664_v14 = vmul.f32 %v4071_v1, %v2531_v7 }
 0x25f   :  { %v1449_v15 = vpop.f32.mrb[29].mxu0  ;;  %v1695_v16 = vmul.f32 %v4071_v1, %v1609_v48  ;;  %v1989_v19 = vadd.f32 1.0, %v2802_v9  ;;  %v4167_v13 = vadd.f32 %v4040_v50, %v1696_v3 }
 0x260   :  { %v2804_v17 = vpop.eup %2803  ;;  %v1663_v18 = vmul.f32 %v4071_v1, %v1449_v15  ;;  %2811 = vrcp.f32 %v2021_v12  ;;  %v4172_v11 = vadd.f32 %v4040_v50, %v1664_v14 }
 0x261   :  { %v2806_v4 = vpop.eup %2805  ;;  %v2178_v10 = vmul.f32 %v2804_v17, %v4092_v22  ;;  %v4175_v24 = vadd.f32 %v4040_v50, %v1695_v16  ;;  %2813 = vrcp.f32 %v1989_v19  ;;  %v2414_v28 = vmul.f32 -1.442695, %v4167_v13 }
 0x262   :  { %v2808_v6 = vpop.eup %2807  ;;  %v2210_v25 = vmul.f32 %v2806_v4, %v4095_v23  ;;  %v4180_v8 = vadd.f32 %v4040_v50, %v1663_v18  ;;  %v2382_v31 = vmul.f32 -1.442695, %v4172_v11 }
 0x263   :  { %v2810_v29 = vpop.eup %2809  ;;  %2242 = vst.msk [vmem:[%s4261_s4 + $0xc0] sm:$0xff] %vm146_vm0, %v2178_v10  ;;  %v1988_v22 = vadd.f32 1.0, %v2808_v6  ;;  %2815 = vpow2.f32 %v2414_v28  ;;  %v2413_v34 = vmul.f32 -1.442695, %v4175_v24 }
 0x264   :  { %2274 = vst.msk [vmem:[%s4261_s4 + $0x1c0] sm:$0xff] %vm146_vm0, %v2210_v25  ;;  %v2020_v23 = vadd.f32 1.0, %v2810_v29  ;;  %v2381_v32 = vmul.f32 -1.442695, %v4180_v8 }
 0x265   :  { %2817 = vrcp.f32 %v1988_v22 }
 0x266   :  { %2819 = vrcp.f32 %v2020_v23 }
 0x267   :  { %2821 = vpow2.f32 %v2382_v31 }
 0x268   :  { %2823 = vpow2.f32 %v2381_v32 }
 0x269   :  { %2825 = vpow2.f32 %v2413_v34 }
 0x26a   :  { %v2812_v20 = vpop.eup %2811 }
 0x26b   :  { %v2814_v36 = vpop.eup %2813  ;;  %v2213_v35 = vmul.f32 %v2812_v20, %v4122_v41 }
 0x26c   :  { %v2181_v37 = vmul.f32 %v2814_v36, %v4127_v51 }
 0x26d   :  { %v2582_v21 = vpop.f32.mrb[30].mxu1  ;;  %v2816_v40 = vpop.eup %2815  ;;  %2277 = vst.msk [vmem:[%s4261_s4 + $0x1d8] sm:$0xff] %vm146_vm0, %v2213_v35 }
 0x26e   :  { %v2534_v26 = vpop.f32.mrb[30].mxu0  ;;  %v1698_v38 = vmul.f32 %v4071_v1, %v2582_v21  ;;  %v1619_v27 = vpop.f32.mrb[31].mxu1  ;;  %2245 = vst.msk [vmem:[%s4261_s4 + $0xd8] sm:$0xff] %vm146_vm0, %v2181_v37  ;;  %v2023_v45 = vadd.f32 1.0, %v2816_v40 }
 0x26f   :  { %v2818_v46 = vpop.eup %2817  ;;  %v1666_v39 = vmul.f32 %v4071_v1, %v2534_v26  ;;  %v1459_v41 = vpop.f32.mrb[31].mxu0  ;;  %v1697_v33 = vmul.f32 %v4071_v1, %v1619_v27 }
 0x270   :  { %v2820_v52 = vpop.eup %2819  ;;  %v2180_v54 = vmul.f32 %v2818_v46, %v4135_v59  ;;  %v1769_v51 = vadd.f32 %v4040_v50, %v1698_v38  ;;  %v1665_v55 = vmul.f32 %v4071_v1, %v1459_v41  ;;  %2827 = vrcp.f32 %v2023_v45 }
 0x271   :  { %v2822_v58 = vpop.eup %2821  ;;  %v2212_v42 = vmul.f32 %v2820_v52, %v4130_v57  ;;  %v1737_v49 = vadd.f32 %v4040_v50, %v1666_v39  ;;  %v1768_v59 = vadd.f32 %v4040_v50, %v1697_v33 }
 0x272   :  { %v2824_v30 = vpop.eup %2823  ;;  %2244 = vst.msk [vmem:[%s4261_s4 + $0xd0] sm:$0xff] %vm146_vm0, %v2180_v54  ;;  %v1991_v60 = vadd.f32 1.0, %v2822_v58  ;;  %v1736_v61 = vadd.f32 %v4040_v50, %v1665_v55  ;;  %v2416_v63 = vmul.f32 -1.442695, %v1769_v51 }
 0x273   :  { %v2826_v53 = vpop.eup %2825  ;;  %2276 = vst.msk [vmem:[%s4261_s4 + $0x1d0] sm:$0xff] %vm146_vm0, %v2212_v42  ;;  %v1990_v1 = vadd.f32 1.0, %v2824_v30  ;;  %v2384_v57 = vmul.f32 -1.442695, %v1737_v49  ;;  %v2415_v0 = vmul.f32 -1.442695, %v1768_v59 }
 0x274   :  { %2829 = vrcp.f32 %v1991_v60  ;;  %v2022_v62 = vadd.f32 1.0, %v2826_v53  ;;  %v2383_v56 = vmul.f32 -1.442695, %v1736_v61 }
 0x275   :  { %2831 = vrcp.f32 %v1990_v1 }
 0x276   :  { %2833 = vrcp.f32 %v2022_v62 }
 0x277   :  { %2835 = vpow2.f32 %v2384_v57 }
 0x278   :  { %2837 = vpow2.f32 %v2416_v63 }
 0x279   :  { %2839 = vpow2.f32 %v2383_v56 }
 0x27a   :  { %2841 = vpow2.f32 %v2415_v0  ;;  %v2828_v50 = vpop.eup %2827 }
 0x27b   :  { %v2215_v43 = vmul.f32 %v2828_v50, %v4167_v13 }
 0x27d   :  { %2279 = vst.msk [vmem:[%s4261_s4 + $0x1e8] sm:$0xff] %vm146_vm0, %v2215_v43 }
 0x27e   :  { %v2830_v44 = vpop.eup %2829 }
 0x27f   :  { %v2832_v2 = vpop.eup %2831  ;;  %v2183_v47 = vmul.f32 %v2830_v44, %v4172_v11 }
 0x280   :  { %v2834_v5 = vpop.eup %2833  ;;  %v2182_v7 = vmul.f32 %v2832_v2, %v4180_v8 }
 0x281   :  { %v2836_v3 = vpop.eup %2835  ;;  %2247 = vst.msk [vmem:[%s4261_s4 + $0xe8] sm:$0xff] %vm146_vm0, %v2183_v47  ;;  %v2214_v48 = vmul.f32 %v2834_v5, %v4175_v24 }
 0x282   :  { %v2838_v9 = vpop.eup %2837  ;;  %2246 = vst.msk [vmem:[%s4261_s4 + $0xe0] sm:$0xff] %vm146_vm0, %v2182_v7  ;;  %v1993_v12 = vadd.f32 1.0, %v2836_v3 }
 0x283   :  { %v2840_v14 = vpop.eup %2839  ;;  %2278 = vst.msk [vmem:[%s4261_s4 + $0x1e0] sm:$0xff] %vm146_vm0, %v2214_v48  ;;  %v2025_v15 = vadd.f32 1.0, %v2838_v9 }
 0x284   :  { %v2842_v16 = vpop.eup %2841  ;;  %2843 = vrcp.f32 %v1993_v12  ;;  %v1992_v17 = vadd.f32 1.0, %v2840_v14 }
 0x285   :  { %2845 = vrcp.f32 %v2025_v15  ;;  %v2024_v19 = vadd.f32 1.0, %v2842_v16 }
 0x286   :  { %2847 = vrcp.f32 %v1992_v17 }
 0x287   :  { %2849 = vrcp.f32 %v2024_v19 }
 0x28e   :  { %v2844_v13 = vpop.eup %2843 }
 0x28f   :  { %v2846_v18 = vpop.eup %2845  ;;  %v2185_v4 = vmul.f32 %v2844_v13, %v1737_v49 }
 0x290   :  { %v2848_v10 = vpop.eup %2847  ;;  %v2217_v11 = vmul.f32 %v2846_v18, %v1769_v51 }
 0x291   :  { %v2850_v24 = vpop.eup %2849  ;;  %2249 = vst.msk [vmem:[%s4261_s4 + $0xf8] sm:$0xff] %vm146_vm0, %v2185_v4  ;;  %v2184_v6 = vmul.f32 %v2848_v10, %v1736_v61 }
 0x292   :  { %2281 = vst.msk [vmem:[%s4261_s4 + $0x1f8] sm:$0xff] %vm146_vm0, %v2217_v11  ;;  %v2216_v25 = vmul.f32 %v2850_v24, %v1768_v59 }
 0x293   :  { %2248 = vst.msk [vmem:[%s4261_s4 + $0xf0] sm:$0xff] %vm146_vm0, %v2184_v6 }
 0x294   :  { %2280 = vst.msk [vmem:[%s4261_s4 + $0x1f0] sm:$0xff] %vm146_vm0, %v2216_v25 }

</bundles_post_ra>
